<compile_context>
chip_gen: v7x
topology: tpu7x:2x2x1
jax: 0.10.0
libtpu: 0.0.40
codegen_flags: <defaults>
</compile_context>

<pallas_src>
import jax
import jax.numpy as jnp
from jax.experimental import pallas as pl
from jax.experimental.pallas import tpu as pltpu


def _leaky_relu(x, slope=0.3):
    return jnp.where(x > 0, x, slope * x)


def _round_up(x, m):
    return ((x + m - 1) // m) * m


def discriminator_kernel(x_ref, w1_ref, b1_ref, w2_ref, b2_ref, w3r_ref, b3_ref,
                         o_ref):
    # fc1: bf16 MXU matmul, f32 accumulation; bias + LeakyReLU(0.3) in f32.
    x_bf16 = x_ref[...].astype(jnp.bfloat16)        # no-op when x is already bf16
    h1 = jnp.dot(x_bf16, w1_ref[...], preferred_element_type=jnp.float32)
    h1 = _leaky_relu(h1 + b1_ref[...])

    # fc2 (512 -> 32): bf16 operands, f32 accumulation; bias + LeakyReLU(0.3) in f32.
    h2 = jnp.dot(h1.astype(jnp.bfloat16), w2_ref[...],
                 preferred_element_type=jnp.float32)
    h2 = _leaky_relu(h2 + b2_ref[...])

    # fc3 (32 -> 1): VPU multiply + cross-lane reduce instead of a 1-lane MXU push.
    h3 = jnp.sum(h2 * w3r_ref[...], axis=-1, keepdims=True) + b3_ref[...]

    # Sigmoid (EUP exp) + final store.
    o_ref[...] = jax.nn.sigmoid(h3).astype(o_ref.dtype)


def _pick_tiling(B, tile_b):
    """n_tiles = cdiv(B, tile_b); TB rounded to 16 sublanes (bf16 packing).

    For B large enough to split, force an even tile count so the "parallel"
    batch axis balances across v7x's 2 TensorCores."""
    n_tiles = pl.cdiv(B, tile_b)
    if B >= 32:                      # >= 2 tiles of >= 16 rows each
        n_tiles = max(n_tiles, 2)
        if n_tiles % 2:
            n_tiles += 1
    TB = _round_up(pl.cdiv(B, n_tiles), 16)
    return n_tiles, TB


def discriminator_forward(x, params, *, tile_b=None):
    """x: (B, 2048) float32 or bfloat16.
    params: dict of w1,b1,w2,b2,w3,b3 with weights stored as (in, out)."""
    B, F = x.shape
    assert F == 2048, F
    x_bytes = x.dtype.itemsize

    if tile_b is None:
        # Bigger tile when x is bf16 (half the DMA bytes, half the VMEM).
        tile_b = 1024 if x.dtype == jnp.bfloat16 else 512

    # bf16 for the MXU weight streams; biases / fc3 row stay f32.
    w1 = params["w1"].astype(jnp.bfloat16)                 # (2048, 512)
    b1 = params["b1"].astype(jnp.float32)                  # (1, 512)
    w2 = params["w2"].astype(jnp.bfloat16)                 # (512, 32)
    b2 = params["b2"].astype(jnp.float32)                  # (1, 32)
    w3r = params["w3"].reshape(1, 32).astype(jnp.float32)  # (1, 32) row for VPU fc3
    b3 = params["b3"].reshape(1, 1).astype(jnp.float32)    # (1, 1)

    n_tiles, TB = _pick_tiling(B, tile_b)
    B_pad = n_tiles * TB
    if B_pad != B:
        # Padding is now at most ~one tile of rows (vs up to 40% before).
        x = jnp.pad(x, ((0, B_pad - B), (0, 0)))

    def const(shape):
        # Constant block index -> weights stay resident in VMEM across steps.
        return pl.BlockSpec(shape, lambda i: (0, 0))

    flops = 2 * B_pad * (2048 * 512 + 512 * 32 + 32 * 1)
    bytes_accessed = (
        (w1.size + w2.size) * 2
        + (b1.size + b2.size + w3r.size + b3.size) * 4
        + B_pad * 2048 * x_bytes
        + B_pad * 4
    )

    out = pl.pallas_call(
        discriminator_kernel,
        out_shape=jax.ShapeDtypeStruct((B_pad, 1), jnp.float32),
        grid_spec=pltpu.PrefetchScalarGridSpec(
            num_scalar_prefetch=0,
            grid=(n_tiles,),
            in_specs=[
                pl.BlockSpec((TB, 2048), lambda i: (i, 0)),   # streamed x tile
                const(w1.shape), const(b1.shape),             # resident weights
                const(w2.shape), const(b2.shape),
                const(w3r.shape), const(b3.shape),
            ],
            out_specs=pl.BlockSpec((TB, 1), lambda i: (i, 0)),
        ),
        compiler_params=pltpu.CompilerParams(
            dimension_semantics=("parallel",),   # megacore sharding on v7x
            vmem_limit_bytes=32 << 20,           # valid on v5e/v6e/v7x
        ),
        cost_estimate=pl.CostEstimate(
            flops=flops, transcendentals=B_pad, bytes_accessed=bytes_accessed),
    )(x, w1, b1, w2, b2, w3r, b3)

    return out[:B]


def init_params(key):
    """Mirror nn.Linear default init: U(-1/sqrt(fan_in), 1/sqrt(fan_in)).
    Weights stored as (in_features, out_features); biases as (1, out)."""
    dims = [(2048, 512), (512, 32), (32, 1)]
    params = {}
    for i, (fan_in, fan_out) in enumerate(dims, start=1):
        key, kw, kb = jax.random.split(key, 3)
        bound = 1.0 / jnp.sqrt(float(fan_in))
        params[f"w{i}"] = jax.random.uniform(
            kw, (fan_in, fan_out), jnp.float32, -bound, bound)
        params[f"b{i}"] = jax.random.uniform(
            kb, (1, fan_out), jnp.float32, -bound, bound)
    return params


def reference_forward_f32(x, params):
    h = jnp.dot(x.astype(jnp.float32), params["w1"]) + params["b1"]
    h = jnp.where(h > 0, h, 0.3 * h)
    h = jnp.dot(h, params["w2"]) + params["b2"]
    h = jnp.where(h > 0, h, 0.3 * h)
    h = jnp.dot(h, params["w3"]) + params["b3"].reshape(1, 1)
    return jax.nn.sigmoid(h)


def reference_forward_mixed(x, params):
    """Same casting pattern as the kernel (bf16 MXU operands, f32 accumulation)."""
    h = jnp.dot(x.astype(jnp.bfloat16), params["w1"].astype(jnp.bfloat16),
                preferred_element_type=jnp.float32) + params["b1"]
    h = jnp.where(h > 0, h, 0.3 * h)
    h = jnp.dot(h.astype(jnp.bfloat16), params["w2"].astype(jnp.bfloat16),
                preferred_element_type=jnp.float32) + params["b2"]
    h = jnp.where(h > 0, h, 0.3 * h)
    h = jnp.sum(h * params["w3"].reshape(1, 32), axis=-1, keepdims=True)
    h = h + params["b3"].reshape(1, 1)
    return jax.nn.sigmoid(h)


if __name__ == "__main__":
    key = jax.random.PRNGKey(0)
    kx, kx2, kp = jax.random.split(key, 3)
    params = init_params(kp)

    # 1) Small batch (single tile), f32 input.
    B = 8
    x = jax.random.normal(kx, (B, 2048), jnp.float32)
    out = jax.block_until_ready(discriminator_forward(x, params))
    assert out.shape == (B, 1), out.shape
    ref_mixed = reference_forward_mixed(x, params)
    ref_f32 = reference_forward_f32(x, params)
    assert jnp.allclose(out, ref_mixed, atol=1e-4, rtol=1e-4), (out, ref_mixed)
    assert jnp.allclose(out, ref_f32, atol=2e-2, rtol=2e-2), (out, ref_f32)

    # 2) Batch exercising the multi-tile (even n_tiles) + padding path.
    B2 = 48
    x2 = jax.random.normal(kx2, (B2, 2048), jnp.float32)
    out2 = jax.block_until_ready(discriminator_forward(x2, params))
    assert out2.shape == (B2, 1), out2.shape
    ref2 = reference_forward_mixed(x2, params)
    assert jnp.allclose(out2, ref2, atol=1e-4, rtol=1e-4), (out2, ref2)

    # 3) bf16-x fast path (dominant HBM stream halved on v6e/v7x).
    x_bf16 = x.astype(jnp.bfloat16)
    out3 = jax.block_until_ready(discriminator_forward(x_bf16, params))
    assert out3.shape == (B, 1), out3.shape
    ref3 = reference_forward_mixed(x_bf16, params)
    assert jnp.allclose(out3, ref3, atol=1e-4, rtol=1e-4), (out3, ref3)

    print("KERNEL_OK")
</pallas_src>

<mosaic_0001>
module attributes {stable_mosaic.version = 11 : i64} {
  func.func @discriminator_kernel(%arg0: i32, %arg1: memref<16x2048xf32, #tpu.memory_space<vmem>>, %arg2: memref<2048x512xbf16, #tpu.memory_space<vmem>>, %arg3: memref<1x512xf32, #tpu.memory_space<vmem>>, %arg4: memref<512x32xbf16, #tpu.memory_space<vmem>>, %arg5: memref<1x32xf32, #tpu.memory_space<vmem>>, %arg6: memref<1x32xf32, #tpu.memory_space<vmem>>, %arg7: memref<1x1xf32, #tpu.memory_space<vmem>>, %arg8: memref<16x1xf32, #tpu.memory_space<vmem>>) attributes {dimension_semantics = [#tpu.dimension_semantics<parallel>], iteration_bounds = array<i64: 1>, scalar_prefetch = 0 : i64, scratch_operands = 0 : i64, tpu.core_type = #tpu.core_type<tc>, window_params = [{transform_indices = @transform_0, window_bounds = array<i64: 16, 2048>}, {pipeline_mode = #tpu.pipeline_mode<synchronous>, transform_indices = @transform_1, window_bounds = array<i64: 2048, 512>}, {pipeline_mode = #tpu.pipeline_mode<synchronous>, transform_indices = @transform_2, window_bounds = array<i64: 1, 512>}, {pipeline_mode = #tpu.pipeline_mode<synchronous>, transform_indices = @transform_3, window_bounds = array<i64: 512, 32>}, {pipeline_mode = #tpu.pipeline_mode<synchronous>, transform_indices = @transform_4, window_bounds = array<i64: 1, 32>}, {pipeline_mode = #tpu.pipeline_mode<synchronous>, transform_indices = @transform_5, window_bounds = array<i64: 1, 32>}, {pipeline_mode = #tpu.pipeline_mode<synchronous>, transform_indices = @transform_6, window_bounds = array<i64: 1, 1>}, {transform_indices = @transform_7, window_bounds = array<i64: 16, 1>}]} {
    %c0 = arith.constant 0 : index
    %c0_0 = arith.constant 0 : index
    %0 = vector.load %arg1[%c0, %c0_0] : memref<16x2048xf32, #tpu.memory_space<vmem>>, vector<16x2048xf32>
    %1 = arith.truncf %0 : vector<16x2048xf32> to vector<16x2048xbf16>
    %c0_1 = arith.constant 0 : index
    %c0_2 = arith.constant 0 : index
    %2 = vector.load %arg2[%c0_1, %c0_2] : memref<2048x512xbf16, #tpu.memory_space<vmem>>, vector<2048x512xbf16>
    %cst = arith.constant dense<0.000000e+00> : vector<16x512xf32>
    %3 = tpu.matmul %1, %2, %cst {dimension_numbers = #tpu.dot_dimension_numbers<[1], [0], [0], [1], [0, 0, 1, 1], [], []>} : vector<16x2048xbf16>, vector<2048x512xbf16>, vector<16x512xf32> -> vector<16x512xf32>
    %c0_3 = arith.constant 0 : index
    %c0_4 = arith.constant 0 : index
    %4 = vector.load %arg3[%c0_3, %c0_4] : memref<1x512xf32, #tpu.memory_space<vmem>>, vector<1x512xf32>
    %5 = vector.broadcast %4 : vector<1x512xf32> to vector<16x512xf32>
    %6 = arith.addf %3, %5 : vector<16x512xf32>
    %cst_5 = arith.constant 0.000000e+00 : f32
    %7 = vector.broadcast %cst_5 : f32 to vector<16x512xf32>
    %8 = arith.cmpf ogt, %6, %7 : vector<16x512xf32>
    %cst_6 = arith.constant 3.000000e-01 : f32
    %9 = vector.broadcast %cst_6 : f32 to vector<16x512xf32>
    %10 = arith.mulf %9, %6 : vector<16x512xf32>
    %11 = arith.select %8, %6, %10 : vector<16x512xi1>, vector<16x512xf32>
    %12 = arith.truncf %11 : vector<16x512xf32> to vector<16x512xbf16>
    %c0_7 = arith.constant 0 : index
    %c0_8 = arith.constant 0 : index
    %13 = vector.load %arg4[%c0_7, %c0_8] : memref<512x32xbf16, #tpu.memory_space<vmem>>, vector<512x32xbf16>
    %cst_9 = arith.constant dense<0.000000e+00> : vector<16x32xf32>
    %14 = tpu.matmul %12, %13, %cst_9 {dimension_numbers = #tpu.dot_dimension_numbers<[1], [0], [0], [1], [0, 0, 1, 1], [], []>} : vector<16x512xbf16>, vector<512x32xbf16>, vector<16x32xf32> -> vector<16x32xf32>
    %c0_10 = arith.constant 0 : index
    %c0_11 = arith.constant 0 : index
    %15 = vector.load %arg5[%c0_10, %c0_11] : memref<1x32xf32, #tpu.memory_space<vmem>>, vector<1x32xf32>
    %16 = vector.broadcast %15 : vector<1x32xf32> to vector<16x32xf32>
    %17 = arith.addf %14, %16 : vector<16x32xf32>
    %cst_12 = arith.constant 0.000000e+00 : f32
    %18 = vector.broadcast %cst_12 : f32 to vector<16x32xf32>
    %19 = arith.cmpf ogt, %17, %18 : vector<16x32xf32>
    %cst_13 = arith.constant 3.000000e-01 : f32
    %20 = vector.broadcast %cst_13 : f32 to vector<16x32xf32>
    %21 = arith.mulf %20, %17 : vector<16x32xf32>
    %22 = arith.select %19, %17, %21 : vector<16x32xi1>, vector<16x32xf32>
    %c0_14 = arith.constant 0 : index
    %c0_15 = arith.constant 0 : index
    %23 = vector.load %arg6[%c0_14, %c0_15] : memref<1x32xf32, #tpu.memory_space<vmem>>, vector<1x32xf32>
    %24 = vector.broadcast %23 : vector<1x32xf32> to vector<16x32xf32>
    %25 = arith.mulf %22, %24 : vector<16x32xf32>
    %cst_16 = arith.constant dense<0.000000e+00> : vector<16xf32>
    %26 = vector.multi_reduction <add>, %25, %cst_16 [1] : vector<16x32xf32> to vector<16xf32>
    %27 = vector.shape_cast %26 : vector<16xf32> to vector<16x1xf32>
    %c0_17 = arith.constant 0 : index
    %c0_18 = arith.constant 0 : index
    %28 = vector.load %arg7[%c0_17, %c0_18] : memref<1x1xf32, #tpu.memory_space<vmem>>, vector<1x1xf32>
    %29 = vector.broadcast %28 : vector<1x1xf32> to vector<16x1xf32>
    %30 = arith.addf %27, %29 : vector<16x1xf32>
    %31 = arith.negf %30 : vector<16x1xf32>
    %32 = math.exp %31 : vector<16x1xf32>
    %cst_19 = arith.constant 1.000000e+00 : f32
    %33 = vector.broadcast %cst_19 : f32 to vector<16x1xf32>
    %34 = arith.addf %33, %32 : vector<16x1xf32>
    %35 = arith.divf %33, %34 : vector<16x1xf32>
    %c0_20 = arith.constant 0 : index
    %c0_21 = arith.constant 0 : index
    %36 = vector.load %arg8[%c0_20, %c0_21] : memref<16x1xf32, #tpu.memory_space<vmem>>, vector<16x1xf32>
    tpu.vector_store %arg8[%c0_20, %c0_21], %35 {strides = array<i32>} : memref<16x1xf32, #tpu.memory_space<vmem>>, vector<16x1xf32>,
    return
  }
  func.func @transform_0(%arg0: i32) -> (i32, i32) {
    %c0_i32 = arith.constant 0 : i32
    %c0_i32_0 = arith.constant 0 : i32
    return %arg0, %c0_i32 : i32, i32
  }
  func.func @transform_1(%arg0: i32) -> (i32, i32) {
    %c0_i32 = arith.constant 0 : i32
    %c0_i32_0 = arith.constant 0 : i32
    %c0_i32_1 = arith.constant 0 : i32
    return %c0_i32, %c0_i32_0 : i32, i32
  }
  func.func @transform_2(%arg0: i32) -> (i32, i32) {
    %c0_i32 = arith.constant 0 : i32
    %c0_i32_0 = arith.constant 0 : i32
    %c0_i32_1 = arith.constant 0 : i32
    return %c0_i32, %c0_i32_0 : i32, i32
  }
  func.func @transform_3(%arg0: i32) -> (i32, i32) {
    %c0_i32 = arith.constant 0 : i32
    %c0_i32_0 = arith.constant 0 : i32
    %c0_i32_1 = arith.constant 0 : i32
    return %c0_i32, %c0_i32_0 : i32, i32
  }
  func.func @transform_4(%arg0: i32) -> (i32, i32) {
    %c0_i32 = arith.constant 0 : i32
    %c0_i32_0 = arith.constant 0 : i32
    %c0_i32_1 = arith.constant 0 : i32
    return %c0_i32, %c0_i32_0 : i32, i32
  }
  func.func @transform_5(%arg0: i32) -> (i32, i32) {
    %c0_i32 = arith.constant 0 : i32
    %c0_i32_0 = arith.constant 0 : i32
    %c0_i32_1 = arith.constant 0 : i32
    return %c0_i32, %c0_i32_0 : i32, i32
  }
  func.func @transform_6(%arg0: i32) -> (i32, i32) {
    %c0_i32 = arith.constant 0 : i32
    %c0_i32_0 = arith.constant 0 : i32
    %c0_i32_1 = arith.constant 0 : i32
    return %c0_i32, %c0_i32_0 : i32, i32
  }
  func.func @transform_7(%arg0: i32) -> (i32, i32) {
    %c0_i32 = arith.constant 0 : i32
    %c0_i32_0 = arith.constant 0 : i32
    return %arg0, %c0_i32 : i32, i32
  }
}

</mosaic_0001>

<bundles_post_ra>
// kernel: tpu_custom_call.1
= control target key start
LH: loop header
LB: loop body
LE: loop exit
PB: predicated region body
PF: predicated region fallthrough
CT: control target
= control target key end

     0   :  { %s6153_s0 = inlined_call_operand.hbm [shape: f32[16,2048], index: 0, kind: input, shape index: {}]   ;;  %s6154_s1 = inlined_call_operand.hbm [shape: bf16[2048,512], index: 1, kind: input, shape index: {}]   ;;  %s6155_s2 = inlined_call_operand.hbm [shape: f32[1,512], index: 2, kind: input, shape index: {}]   ;;  %s6156_s3 = inlined_call_operand.vmem [shape: bf16[512,32], index: 3, kind: input, shape index: {}]   ;;  %s6157_s4 = inlined_call_operand.hbm [shape: f32[1,32], index: 4, kind: input, shape index: {}]   ;;  %s6158_s5 = inlined_call_operand.hbm [shape: f32[1,32], index: 5, kind: input, shape index: {}]   ;;  %s6159_s6 = inlined_call_operand.<no memory space> [shape: f32[1,1], index: 6, kind: input, shape index: {}]   ;;  %s6160_s7 = inlined_call_operand.vmem [shape: f32[16,1], index: 7, kind: output, shape index: {}]  }
   0x1   :  { %v12_v0 = vstv %s6159_s6 }
   0x2   :  { %13 = vst [vmem:[#allocation2] sm:$0x1] %v12_v0 }
   0x3   :  { %14 = vsyncpa [#allocation4], 0 }
   0x4   :  { %15 = vsyncpa [#allocation6], 0 }
   0x5   :  { %16 = vsyncpa [#allocation9], 0  ;;  %s5937_s26 = smov [#allocation5]   ;;  %s5821_s30 = scalar_lea.hbm %s6154_s1, 65536 }
   0x6   :  { %s34_s27 = sshll.u32 %s5937_s26, 4  ;;  %p5822_p0 = scmp.ne.s32.totalorder %s6154_s1, %s5821_s30  ;;  %s35_s27 = int_to_ptr.vmem [resolvable:$true] %s34_s27 }
   0x7   :  { %p5825_p1 = scmp.lt.u32.totalorder %s5821_s30, %s6154_s1 }
   0x9   :  { %p5827_p2 = pnand %p5825_p1, %p5822_p0 }
   0xb   :  { %5830 = shalt.err (!%p5827_p2)
}
   0xc   :  { %s5831_s6 = scalar_lea.vmem %s35_s27, 65536  ;;  %p5836_p4 = scmp.lt.s32.totalorder %s35_s27, %s35_s27 }
   0xd   :  { %p5832_p3 = scmp.ne.s32.totalorder %s35_s27, %s5831_s6  ;;  %p5837_p5 = scmp.lt.s32.totalorder %s5831_s6, %s5831_s6 }
   0xf   :  { %p5838_p6 = por %p5837_p5, %p5836_p4 }
  0x11   :  { %p5839_p7 = pnand %p5838_p6, %p5832_p3 }
  0x13   :  { %5842 = shalt.err (!%p5839_p7)
}
  0x14   :  { %s5938_s12 = smov 256   ;;  %s5939_s13 = smov 16  }
  0x15   :  { %40 = dma.hbm_to_vmem [thread:$0]  %s6154_s1, 65536, %s35_s27, [#allocation6], %s5938_s12, %s5938_s12, %s5939_s13  }
  0x16   :  { %s5940_s16 = smov [#allocation8]   ;;  %s5941_s18 = smov [#allocation3]  }
  0x17   :  { %s59_s17 = sshll.u32 %s5940_s16, 4  ;;  %s22_s19 = sshll.u32 %s5941_s18, 4  ;;  %s60_s17 = int_to_ptr.vmem [resolvable:$true] %s59_s17  ;;  %s23_s19 = int_to_ptr.vmem [resolvable:$true] %s22_s19 }
  0x18   :  { %s5843_s22 = scalar_lea.hbm %s6157_s4, 16 }
  0x19   :  { %p5844_p8 = scmp.ne.s32.totalorder %s6157_s4, %s5843_s22  ;;  %p5847_p9 = scmp.lt.u32.totalorder %s5843_s22, %s6157_s4 }
  0x1b   :  { %p5849_p10 = pnand %p5847_p9, %p5844_p8 }
  0x1d   :  { %5852 = shalt.err (!%p5849_p10)
}
  0x1e   :  { %s5853_s1 = scalar_lea.vmem %s60_s17, 16  ;;  %s5857_s27 = scalar_lea.vmem %s60_s17, 32 }
  0x1f   :  { %p5854_p11 = scmp.ne.s32.totalorder %s60_s17, %s5853_s1  ;;  %p5858_p12 = scmp.lt.s32.totalorder %s60_s17, %s60_s17 }
  0x20   :  { %p5859_p13 = scmp.lt.s32.totalorder %s5857_s27, %s5853_s1 }
  0x22   :  { %p5860_p0 = por %p5859_p13, %p5858_p12 }
  0x24   :  { %p5861_p1 = pnand %p5860_p0, %p5854_p11 }
  0x26   :  { %5864 = shalt.err (!%p5861_p1)
}
  0x27   :  { %62 = dma.hbm_to_vmem [thread:$0]  %s6157_s4, 16, %s60_s17, [#allocation9]  }
  0x28   :  { %s5865_s9 = scalar_lea.hbm %s6153_s0, 4096 }
  0x29   :  { %p5866_p2 = scmp.ne.s32.totalorder %s6153_s0, %s5865_s9  ;;  %p5869_p3 = scmp.lt.u32.totalorder %s5865_s9, %s6153_s0 }
  0x2b   :  { %p5871_p4 = pnand %p5869_p3, %p5866_p2 }
  0x2d   :  { %5874 = shalt.err (!%p5871_p4)
}
  0x2e   :  { %s5875_s13 = scalar_lea.vmem %s23_s19, 4096  ;;  %p5880_p6 = scmp.lt.s32.totalorder %s23_s19, %s23_s19 }
  0x2f   :  { %p5876_p5 = scmp.ne.s32.totalorder %s23_s19, %s5875_s13  ;;  %p5881_p7 = scmp.lt.s32.totalorder %s5875_s13, %s5875_s13 }
  0x31   :  { %p5882_p8 = por %p5881_p7, %p5880_p6 }
  0x33   :  { %p5883_p9 = pnand %p5882_p8, %p5876_p5 }
  0x35   :  { %5886 = shalt.err (!%p5883_p9)
}
  0x36   :  { %s5942_s4 = smov 2048   ;;  %s5943_s14 = smov 128  }
  0x37   :  { %28 = dma.hbm_to_vmem [thread:$0]  %s6153_s0, 4096, %s23_s19, [#allocation4], %s5942_s4, %s5942_s4, %s5943_s14  }
  0x38   :  { %s5944_s17 = smov [#allocation7]   ;;  %s5945_s20 = smov [#allocation10]  }
  0x39   :  { %s47_s18 = sshll.u32 %s5944_s17, 4  ;;  %s69_s21 = sshll.u32 %s5945_s20, 4  ;;  %s48_s18 = int_to_ptr.vmem [resolvable:$true] %s47_s18  ;;  %s70_s21 = int_to_ptr.vmem [resolvable:$true] %s69_s21 }
  0x3a   :  { %s5887_s24 = scalar_lea.hbm %s6155_s2, 64 }
  0x3b   :  { %p5888_p10 = scmp.ne.s32.totalorder %s6155_s2, %s5887_s24  ;;  %p5891_p11 = scmp.lt.u32.totalorder %s5887_s24, %s6155_s2 }
  0x3d   :  { %p5893_p12 = pnand %p5891_p11, %p5888_p10 }
  0x3f   :  { %5896 = shalt.err (!%p5893_p12)
}
  0x40   :  { %s5897_s0 = scalar_lea.vmem %s48_s18, 64  ;;  %p5902_p0 = scmp.lt.s32.totalorder %s48_s18, %s48_s18 }
  0x41   :  { %p5898_p13 = scmp.ne.s32.totalorder %s48_s18, %s5897_s0  ;;  %p5903_p1 = scmp.lt.s32.totalorder %s5897_s0, %s5897_s0 }
  0x43   :  { %p5904_p2 = por %p5903_p1, %p5902_p0 }
  0x45   :  { %p5905_p3 = pnand %p5904_p2, %p5898_p13 }
  0x47   :  { %5908 = shalt.err (!%p5905_p3)
}
  0x48   :  { %50 = dma.hbm_to_vmem [thread:$0]  %s6155_s2, 64, %s48_s18, [#allocation6]  }
  0x49   :  { %s5909_s8 = scalar_lea.hbm %s6158_s5, 16 }
  0x4a   :  { %p5910_p4 = scmp.ne.s32.totalorder %s6158_s5, %s5909_s8  ;;  %p5913_p5 = scmp.lt.u32.totalorder %s5909_s8, %s6158_s5 }
  0x4c   :  { %p5915_p6 = pnand %p5913_p5, %p5910_p4 }
  0x4e   :  { %5918 = shalt.err (!%p5915_p6)
}
  0x4f   :  { %s5919_s12 = scalar_lea.vmem %s70_s21, 16  ;;  %s5923_s13 = scalar_lea.vmem %s70_s21, 32 }
  0x50   :  { %p5920_p7 = scmp.ne.s32.totalorder %s70_s21, %s5919_s12  ;;  %p5924_p8 = scmp.lt.s32.totalorder %s70_s21, %s70_s21 }
  0x51   :  { %p5925_p9 = scmp.lt.s32.totalorder %s5923_s13, %s5919_s12 }
  0x53   :  { %p5926_p10 = por %p5925_p9, %p5924_p8 }
  0x55   :  { %p5927_p11 = pnand %p5926_p10, %p5920_p7 }
  0x57   :  { %5930 = shalt.err (!%p5927_p11)
}
  0x58   :  { %72 = dma.hbm_to_vmem [thread:$0]  %s6158_s5, 16, %s70_s21, [#allocation9]  }
  0x59   :  { %5931 = dma.done.wait [#allocation4], 4096  }
  0x5a   :  { %5932 = vsyncadd [#allocation4], 4294963200 }
  0x5b   :  { %5933 = dma.done.wait [#allocation6], 65600  }
  0x5c   :  { %5934 = vsyncadd [#allocation6], 4294901696 }
  0x5d   :  { %5935 = dma.done.wait [#allocation9], 32  }
  0x5e   :  { %5936 = vsyncadd [#allocation9], 4294967264  ;;  %v5013_v1 = vld [vmem:[#allocation5 + $0x4] ss:$16 sps:$4 sm:$0xff]   ;;  %v5015_v2 = vld [vmem:[#allocation5 + $0xc] ss:$16 sps:$4 sm:$0xff]  }
  0x5f   :  { %3233 = vmatprep.subr.bf16.mxu0 %v5013_v1  ;;  %v5017_v3 = vld [vmem:[#allocation5] ss:$16 sps:$4 sm:$0xff]   ;;  %v5018_v4 = vld [vmem:[#allocation5 + $0x8] ss:$16 sps:$4 sm:$0xff]   ;;  %3577 = vmatprep.subr.bf16.mxu1 %v5015_v2  ;;  %v5019_v5 = vld [vmem:[#allocation5 + $0x24] ss:$16 sps:$4 sm:$0xff]  }
  0x60   :  { %3234 = vmatpush1.bf16.msra.mxu0 %v5017_v3  ;;  %3578 = vmatpush1.bf16.msra.mxu1 %v5018_v4  ;;  %v5021_v6 = vld [vmem:[#allocation5 + $0x2c] ss:$16 sps:$4 sm:$0xff]   ;;  %v5023_v7 = vld [vmem:[#allocation5 + $0x20] ss:$16 sps:$4 sm:$0xff]   ;;  %v5024_v8 = vld [vmem:[#allocation5 + $0x28] ss:$16 sps:$4 sm:$0xff]  }
  0x61   :  { %3235 = vmatprep.subr.bf16.mxu0 %v5019_v5  ;;  %3579 = vmatprep.subr.bf16.mxu1 %v5021_v6  ;;  %v5025_v9 = vld [vmem:[#allocation5 + $0x44] ss:$16 sps:$4 sm:$0xff]   ;;  %v5027_v10 = vld [vmem:[#allocation5 + $0x4c] ss:$16 sps:$4 sm:$0xff]   ;;  %v5029_v11 = vld [vmem:[#allocation5 + $0x40] ss:$16 sps:$4 sm:$0xff]  }
  0x62   :  { %v5030_v12 = vld [vmem:[#allocation5 + $0x48] ss:$16 sps:$4 sm:$0xff]   ;;  %v5031_v13 = vld [vmem:[#allocation5 + $0x64] ss:$16 sps:$4 sm:$0xff]   ;;  %v5033_v14 = vld [vmem:[#allocation5 + $0x6c] ss:$16 sps:$4 sm:$0xff]  }
  0x63   :  { %v5035_v15 = vld [vmem:[#allocation5 + $0x60] ss:$16 sps:$4 sm:$0xff]   ;;  %v5036_v16 = vld [vmem:[#allocation5 + $0x68] ss:$16 sps:$4 sm:$0xff]   ;;  %v5037_v17 = vld [vmem:[#allocation5 + $0x84] ss:$16 sps:$4 sm:$0xff]  }
  0x64   :  { %3236 = vmatpush1.bf16.msra.mxu0 %v5023_v7  ;;  %3580 = vmatpush1.bf16.msra.mxu1 %v5024_v8  ;;  %v5039_v18 = vld [vmem:[#allocation5 + $0x8c] ss:$16 sps:$4 sm:$0xff]   ;;  %v5041_v19 = vld [vmem:[#allocation5 + $0x80] ss:$16 sps:$4 sm:$0xff]   ;;  %v5042_v20 = vld [vmem:[#allocation5 + $0x88] ss:$16 sps:$4 sm:$0xff]  }
  0x65   :  { %3237 = vmatprep.subr.bf16.mxu0 %v5025_v9  ;;  %3581 = vmatprep.subr.bf16.mxu1 %v5027_v10  ;;  %v5043_v21 = vld [vmem:[#allocation5 + $0xa4] ss:$16 sps:$4 sm:$0xff]   ;;  %v5045_v22 = vld [vmem:[#allocation5 + $0xac] ss:$16 sps:$4 sm:$0xff]   ;;  %v5047_v23 = vld [vmem:[#allocation5 + $0xa0] ss:$16 sps:$4 sm:$0xff]  }
  0x66   :  { %v5048_v24 = vld [vmem:[#allocation5 + $0xa8] ss:$16 sps:$4 sm:$0xff]   ;;  %v5049_v25 = vld [vmem:[#allocation5 + $0xc4] ss:$16 sps:$4 sm:$0xff]   ;;  %v5051_v26 = vld [vmem:[#allocation5 + $0xcc] ss:$16 sps:$4 sm:$0xff]  }
  0x67   :  { %v5053_v27 = vld [vmem:[#allocation5 + $0xc0] ss:$16 sps:$4 sm:$0xff]   ;;  %v5054_v28 = vld [vmem:[#allocation5 + $0xc8] ss:$16 sps:$4 sm:$0xff]   ;;  %v5055_v29 = vld [vmem:[#allocation5 + $0xe4] ss:$16 sps:$4 sm:$0xff]  }
  0x68   :  { %3238 = vmatpush1.bf16.msra.mxu0 %v5029_v11  ;;  %3582 = vmatpush1.bf16.msra.mxu1 %v5030_v12  ;;  %v5057_v30 = vld [vmem:[#allocation5 + $0xec] ss:$16 sps:$4 sm:$0xff]   ;;  %v5059_v31 = vld [vmem:[#allocation5 + $0xe0] ss:$16 sps:$4 sm:$0xff]   ;;  %v5060_v32 = vld [vmem:[#allocation5 + $0xe8] ss:$16 sps:$4 sm:$0xff]  }
  0x69   :  { %3239 = vmatprep.subr.bf16.mxu0 %v5031_v13  ;;  %3583 = vmatprep.subr.bf16.mxu1 %v5033_v14  ;;  %v5061_v33 = vld [vmem:[#allocation5 + $0x104] ss:$16 sps:$4 sm:$0xff]   ;;  %v5063_v34 = vld [vmem:[#allocation5 + $0x10c] ss:$16 sps:$4 sm:$0xff]   ;;  %v5065_v35 = vld [vmem:[#allocation5 + $0x100] ss:$16 sps:$4 sm:$0xff]  }
  0x6a   :  { %v5066_v36 = vld [vmem:[#allocation5 + $0x108] ss:$16 sps:$4 sm:$0xff]   ;;  %v5067_v37 = vld [vmem:[#allocation5 + $0x124] ss:$16 sps:$4 sm:$0xff]   ;;  %v5069_v38 = vld [vmem:[#allocation5 + $0x12c] ss:$16 sps:$4 sm:$0xff]  }
  0x6b   :  { %v5071_v39 = vld [vmem:[#allocation5 + $0x120] ss:$16 sps:$4 sm:$0xff]   ;;  %v5072_v40 = vld [vmem:[#allocation5 + $0x128] ss:$16 sps:$4 sm:$0xff]   ;;  %v5073_v41 = vld [vmem:[#allocation5 + $0x144] ss:$16 sps:$4 sm:$0xff]  }
  0x6c   :  { %3240 = vmatpush1.bf16.msra.mxu0 %v5035_v15  ;;  %3584 = vmatpush1.bf16.msra.mxu1 %v5036_v16  ;;  %v5075_v42 = vld [vmem:[#allocation5 + $0x14c] ss:$16 sps:$4 sm:$0xff]   ;;  %v5077_v43 = vld [vmem:[#allocation5 + $0x140] ss:$16 sps:$4 sm:$0xff]   ;;  %v5078_v44 = vld [vmem:[#allocation5 + $0x148] ss:$16 sps:$4 sm:$0xff]  }
  0x6d   :  { %3241 = vmatprep.subr.bf16.mxu0 %v5037_v17  ;;  %3585 = vmatprep.subr.bf16.mxu1 %v5039_v18  ;;  %v5079_v45 = vld [vmem:[#allocation5 + $0x164] ss:$16 sps:$4 sm:$0xff]   ;;  %v5081_v46 = vld [vmem:[#allocation5 + $0x16c] ss:$16 sps:$4 sm:$0xff]   ;;  %v5083_v49 = vld [vmem:[#allocation5 + $0x160] ss:$16 sps:$4 sm:$0xff]  }
  0x6e   :  { %v92_v47 = vld [vmem:[#allocation3 + $0x8] sm:$0xff]  ;;  %v5085_v52 = vld [vmem:[#allocation5 + $0x184] ss:$16 sps:$4 sm:$0xff]   ;;  %v5089_v54 = vld [vmem:[#allocation5 + $0x180] ss:$16 sps:$4 sm:$0xff]   ;;  %vm4309_vm9 = vcmask 261120  }
  0x6f   :  { %v108_v48 = vld [vmem:[#allocation3 + $0x88] sm:$0xff]  ;;  %v5091_v56 = vld [vmem:[#allocation5 + $0x1a4] ss:$16 sps:$4 sm:$0xff]   ;;  %v5095_v58 = vld [vmem:[#allocation5 + $0x1a0] ss:$16 sps:$4 sm:$0xff]   ;;  %vm4337_vm11 = vcmask 7168  }
  0x70   :  { %3242 = vmatpush1.bf16.msra.mxu0 %v5041_v19  ;;  %3586 = vmatpush1.bf16.msra.mxu1 %v5042_v20  ;;  %v5084_v50 = vld [vmem:[#allocation5 + $0x168] ss:$16 sps:$4 sm:$0xff]   ;;  %v124_v51 = vpack.c.bf16 %v108_v48, %v92_v47  ;;  %v5087_v53 = vld [vmem:[#allocation5 + $0x18c] ss:$16 sps:$4 sm:$0xff]   ;;  %v5097_v60 = vld [vmem:[#allocation5 + $0x1c4] ss:$16 sps:$4 sm:$0xff]  }
  0x71   :  { %3243 = vmatprep.subr.bf16.mxu0 %v5043_v21  ;;  %3587 = vmatprep.subr.bf16.mxu1 %v5045_v22  ;;  %v5090_v55 = vld [vmem:[#allocation5 + $0x188] ss:$16 sps:$4 sm:$0xff]   ;;  %v5093_v57 = vld [vmem:[#allocation5 + $0x1ac] ss:$16 sps:$4 sm:$0xff]   ;;  %v5101_v62 = vld [vmem:[#allocation5 + $0x1c0] ss:$16 sps:$4 sm:$0xff]  }
  0x72   :  { %3265 = vmatprep.mubr.bf16.mxu0 %v124_v51  ;;  %3609 = vmatprep.mubr.bf16.mxu1 %v124_v51  ;;  %v5096_v59 = vld [vmem:[#allocation5 + $0x1a8] ss:$16 sps:$4 sm:$0xff]   ;;  %v5099_v61 = vld [vmem:[#allocation5 + $0x1cc] ss:$16 sps:$4 sm:$0xff]   ;;  %v5103_v0 = vld [vmem:[#allocation5 + $0x1e4] ss:$16 sps:$4 sm:$0xff]  }
  0x73   :  { %v5102_v63 = vld [vmem:[#allocation5 + $0x1c8] ss:$16 sps:$4 sm:$0xff]   ;;  %v5105_v1 = vld [vmem:[#allocation5 + $0x1ec] ss:$16 sps:$4 sm:$0xff]   ;;  %v5107_v2 = vld [vmem:[#allocation5 + $0x1e0] ss:$16 sps:$4 sm:$0xff]  }
  0x74   :  { %3244 = vmatpush1.bf16.msra.mxu0 %v5047_v23  ;;  %3588 = vmatpush1.bf16.msra.mxu1 %v5048_v24  ;;  %v5108_v3 = vld [vmem:[#allocation5 + $0x1e8] ss:$16 sps:$4 sm:$0xff]   ;;  %v5111_v4 = vld [vmem:[#allocation5 + $0x204] ss:$16 sps:$4 sm:$0xff]   ;;  %v5114_v7 = vld [vmem:[#allocation5 + $0x20c] ss:$16 sps:$4 sm:$0xff]  }
  0x75   :  { %3245 = vmatprep.subr.bf16.mxu0 %v5049_v25  ;;  %3589 = vmatprep.subr.bf16.mxu1 %v5051_v26  ;;  %v91_v5 = vld [vmem:[#allocation3] sm:$0xff]  ;;  %v5112_v9 = vld [vmem:[#allocation5 + $0x208] ss:$16 sps:$4 sm:$0xff]   ;;  %v5120_v12 = vld [vmem:[#allocation5 + $0x22c] ss:$16 sps:$4 sm:$0xff]  }
  0x76   :  { %v107_v6 = vld [vmem:[#allocation3 + $0x80] sm:$0xff]  ;;  %v5118_v14 = vld [vmem:[#allocation5 + $0x228] ss:$16 sps:$4 sm:$0xff]   ;;  %v5126_v16 = vld [vmem:[#allocation5 + $0x24c] ss:$16 sps:$4 sm:$0xff]  }
  0x77   :  { %v5109_v8 = vld [vmem:[#allocation5 + $0x200] ss:$16 sps:$4 sm:$0xff]   ;;  %v123_v10 = vpack.c.bf16 %v107_v6, %v91_v5  ;;  %v5117_v11 = vld [vmem:[#allocation5 + $0x224] ss:$16 sps:$4 sm:$0xff]   ;;  %v5124_v18 = vld [vmem:[#allocation5 + $0x248] ss:$16 sps:$4 sm:$0xff]  }
  0x78   :  { %3246 = vmatpush1.bf16.msra.mxu0 %v5053_v27  ;;  %3590 = vmatpush1.bf16.msra.mxu1 %v5054_v28  ;;  %v5115_v13 = vld [vmem:[#allocation5 + $0x220] ss:$16 sps:$4 sm:$0xff]   ;;  %v5123_v15 = vld [vmem:[#allocation5 + $0x244] ss:$16 sps:$4 sm:$0xff]   ;;  %v5132_v20 = vld [vmem:[#allocation5 + $0x26c] ss:$16 sps:$4 sm:$0xff]  }
  0x79   :  { %3247 = vmatprep.subr.bf16.mxu0 %v5055_v29  ;;  %3591 = vmatprep.subr.bf16.mxu1 %v5057_v30  ;;  %v5121_v17 = vld [vmem:[#allocation5 + $0x240] ss:$16 sps:$4 sm:$0xff]   ;;  %v5129_v19 = vld [vmem:[#allocation5 + $0x264] ss:$16 sps:$4 sm:$0xff]   ;;  %v5130_v22 = vld [vmem:[#allocation5 + $0x268] ss:$16 sps:$4 sm:$0xff]  }
  0x7a   :  { %v5127_v21 = vld [vmem:[#allocation5 + $0x260] ss:$16 sps:$4 sm:$0xff]   ;;  %v5135_v23 = vld [vmem:[#allocation5 + $0x284] ss:$16 sps:$4 sm:$0xff]   ;;  %v5138_v24 = vld [vmem:[#allocation5 + $0x28c] ss:$16 sps:$4 sm:$0xff]  }
  0x7b   :  { %v5133_v25 = vld [vmem:[#allocation5 + $0x280] ss:$16 sps:$4 sm:$0xff]   ;;  %v5136_v26 = vld [vmem:[#allocation5 + $0x288] ss:$16 sps:$4 sm:$0xff]   ;;  %v5141_v27 = vld [vmem:[#allocation5 + $0x2a4] ss:$16 sps:$4 sm:$0xff]  }
  0x7c   :  { %3248 = vmatpush1.bf16.msra.mxu0 %v5059_v31  ;;  %3592 = vmatpush1.bf16.msra.mxu1 %v5060_v32  ;;  %v5144_v28 = vld [vmem:[#allocation5 + $0x2ac] ss:$16 sps:$4 sm:$0xff]   ;;  %v5139_v29 = vld [vmem:[#allocation5 + $0x2a0] ss:$16 sps:$4 sm:$0xff]   ;;  %v5142_v30 = vld [vmem:[#allocation5 + $0x2a8] ss:$16 sps:$4 sm:$0xff]  }
  0x7d   :  { %3249 = vmatprep.subr.bf16.mxu0 %v5061_v33  ;;  %3593 = vmatprep.subr.bf16.mxu1 %v5063_v34  ;;  %v5147_v31 = vld [vmem:[#allocation5 + $0x2c4] ss:$16 sps:$4 sm:$0xff]   ;;  %v5150_v32 = vld [vmem:[#allocation5 + $0x2cc] ss:$16 sps:$4 sm:$0xff]   ;;  %v5163_v48 = vld [vmem:[#allocation5 + $0x320] ss:$16 sps:$4 sm:$0xff]  }
  0x7e   :  { %v94_v33 = vld [vmem:[#allocation3 + $0x18] sm:$0xff]  ;;  %v5201_v6 = vld [vmem:[#allocation5 + $0x3e4] ss:$16 sps:$4 sm:$0xff]  }
  0x7f   :  { %v110_v34 = vld [vmem:[#allocation3 + $0x98] sm:$0xff] }
  0x80   :  { %3250 = vmatpush1.bf16.msra.mxu0 %v5065_v35  ;;  %3594 = vmatpush1.bf16.msra.mxu1 %v5066_v36  ;;  %v5145_v35 = vld [vmem:[#allocation5 + $0x2c0] ss:$16 sps:$4 sm:$0xff]   ;;  %v5148_v36 = vld [vmem:[#allocation5 + $0x2c8] ss:$16 sps:$4 sm:$0xff]   ;;  %v5168_v47 = vld [vmem:[#allocation5 + $0x32c] ss:$16 sps:$4 sm:$0xff]  }
  0x81   :  { %3251 = vmatprep.subr.bf16.mxu0 %v5067_v37  ;;  %3595 = vmatprep.subr.bf16.mxu1 %v5069_v38  ;;  %v126_v37 = vpack.c.bf16 %v110_v34, %v94_v33  ;;  %v5153_v38 = vld [vmem:[#allocation5 + $0x2e4] ss:$16 sps:$4 sm:$0xff]   ;;  %v5174_v51 = vld [vmem:[#allocation5 + $0x34c] ss:$16 sps:$4 sm:$0xff]   ;;  %v5196_v5 = vld [vmem:[#allocation5 + $0x3c8] ss:$16 sps:$4 sm:$0xff]  }
  0x82   :  { %v5234_v33 = vld [vmem:[#allocation5 + $0x48c] ss:$16 sps:$4 sm:$0xff]   ;;  %v5229_v34 = vld [vmem:[#allocation5 + $0x480] ss:$16 sps:$4 sm:$0xff]  }
  0x84   :  { %3252 = vmatpush1.bf16.msra.mxu0 %v5071_v39  ;;  %3596 = vmatpush1.bf16.msra.mxu1 %v5072_v40  ;;  %v5156_v39 = vld [vmem:[#allocation5 + $0x2ec] ss:$16 sps:$4 sm:$0xff]   ;;  %v5151_v40 = vld [vmem:[#allocation5 + $0x2e0] ss:$16 sps:$4 sm:$0xff]  }
  0x85   :  { %3253 = vmatprep.subr.bf16.mxu0 %v5073_v41  ;;  %3597 = vmatprep.subr.bf16.mxu1 %v5075_v42  ;;  %v5154_v41 = vld [vmem:[#allocation5 + $0x2e8] ss:$16 sps:$4 sm:$0xff]   ;;  %v5159_v42 = vld [vmem:[#allocation5 + $0x304] ss:$16 sps:$4 sm:$0xff]  }
  0x88   :  { %3254 = vmatpush1.bf16.msra.mxu0 %v5077_v43  ;;  %3598 = vmatpush1.bf16.msra.mxu1 %v5078_v44  ;;  %v5162_v43 = vld [vmem:[#allocation5 + $0x30c] ss:$16 sps:$4 sm:$0xff]   ;;  %v5157_v44 = vld [vmem:[#allocation5 + $0x300] ss:$16 sps:$4 sm:$0xff]  }
  0x89   :  { %3255 = vmatprep.subr.bf16.mxu0 %v5079_v45  ;;  %3599 = vmatprep.subr.bf16.mxu1 %v5081_v46  ;;  %v5160_v45 = vld [vmem:[#allocation5 + $0x308] ss:$16 sps:$4 sm:$0xff]   ;;  %v5165_v46 = vld [vmem:[#allocation5 + $0x324] ss:$16 sps:$4 sm:$0xff]  }
  0x8c   :  { %3256 = vmatpush1.bf16.msra.mxu0 %v5083_v49  ;;  %3600 = vmatpush1.bf16.msra.mxu1 %v5084_v50  ;;  %v5166_v49 = vld [vmem:[#allocation5 + $0x328] ss:$16 sps:$4 sm:$0xff]   ;;  %v5171_v50 = vld [vmem:[#allocation5 + $0x344] ss:$16 sps:$4 sm:$0xff]  }
  0x8d   :  { %3257 = vmatprep.subr.bf16.mxu0 %v5085_v52  ;;  %3601 = vmatprep.subr.bf16.mxu1 %v5087_v53  ;;  %v5169_v52 = vld [vmem:[#allocation5 + $0x340] ss:$16 sps:$4 sm:$0xff]   ;;  %v5172_v53 = vld [vmem:[#allocation5 + $0x348] ss:$16 sps:$4 sm:$0xff]  }
  0x90   :  { %3258 = vmatpush1.bf16.msra.mxu0 %v5089_v54  ;;  %3602 = vmatpush1.bf16.msra.mxu1 %v5090_v55  ;;  %v5177_v54 = vld [vmem:[#allocation5 + $0x364] ss:$16 sps:$4 sm:$0xff]   ;;  %v5180_v55 = vld [vmem:[#allocation5 + $0x36c] ss:$16 sps:$4 sm:$0xff]  }
  0x91   :  { %3259 = vmatprep.subr.bf16.mxu0 %v5091_v56  ;;  %3603 = vmatprep.subr.bf16.mxu1 %v5093_v57  ;;  %v5175_v56 = vld [vmem:[#allocation5 + $0x360] ss:$16 sps:$4 sm:$0xff]   ;;  %v5178_v57 = vld [vmem:[#allocation5 + $0x368] ss:$16 sps:$4 sm:$0xff]  }
  0x94   :  { %3260 = vmatpush1.bf16.msra.mxu0 %v5095_v58  ;;  %3604 = vmatpush1.bf16.msra.mxu1 %v5096_v59  ;;  %v5183_v58 = vld [vmem:[#allocation5 + $0x384] ss:$16 sps:$4 sm:$0xff]   ;;  %v5186_v59 = vld [vmem:[#allocation5 + $0x38c] ss:$16 sps:$4 sm:$0xff]  }
  0x95   :  { %3261 = vmatprep.subr.bf16.mxu0 %v5097_v60  ;;  %3605 = vmatprep.subr.bf16.mxu1 %v5099_v61  ;;  %v5181_v60 = vld [vmem:[#allocation5 + $0x380] ss:$16 sps:$4 sm:$0xff]   ;;  %v5184_v61 = vld [vmem:[#allocation5 + $0x388] ss:$16 sps:$4 sm:$0xff]  }
  0x98   :  { %3262 = vmatpush1.bf16.msra.mxu0 %v5101_v62  ;;  %3606 = vmatpush1.bf16.msra.mxu1 %v5102_v63  ;;  %v5189_v62 = vld [vmem:[#allocation5 + $0x3a4] ss:$16 sps:$4 sm:$0xff]   ;;  %v5192_v63 = vld [vmem:[#allocation5 + $0x3ac] ss:$16 sps:$4 sm:$0xff]  }
  0x99   :  { %3263 = vmatprep.subr.bf16.mxu0 %v5103_v0  ;;  %3607 = vmatprep.subr.bf16.mxu1 %v5105_v1  ;;  %v5187_v0 = vld [vmem:[#allocation5 + $0x3a0] ss:$16 sps:$4 sm:$0xff]   ;;  %v5190_v1 = vld [vmem:[#allocation5 + $0x3a8] ss:$16 sps:$4 sm:$0xff]  }
  0x9c   :  { %3264 = vmatpush1.bf16.msra.mxu0 %v5107_v2  ;;  %3608 = vmatpush1.bf16.msra.mxu1 %v5108_v3  ;;  %v5195_v2 = vld [vmem:[#allocation5 + $0x3c4] ss:$16 sps:$4 sm:$0xff]   ;;  %v5198_v3 = vld [vmem:[#allocation5 + $0x3cc] ss:$16 sps:$4 sm:$0xff]  }
  0x9d   :  { %3276 = vmatprep.subr.bf16.mxu0 %v5111_v4  ;;  %3620 = vmatprep.subr.bf16.mxu1 %v5114_v7  ;;  %v5193_v4 = vld [vmem:[#allocation5 + $0x3c0] ss:$16 sps:$4 sm:$0xff]   ;;  %v5204_v7 = vld [vmem:[#allocation5 + $0x3ec] ss:$16 sps:$4 sm:$0xff]  }
  0x9f   :  { %3266 = vmatmul.mubr.bf16.vlgmr.msra.gmra.mrb[0].mxu0 %v123_v10  ;;  %3610 = vmatmul.mubr.bf16.vlgmr.msra.gmra.mrb[0].mxu1 %v123_v10  ;;  %v5207_v10 = vld [vmem:[#allocation5 + $0x404] ss:$16 sps:$4 sm:$0xff]  }
  0xa0   :  { %3277 = vmatpush1.bf16.msra.mxu0 %v5109_v8  ;;  %3621 = vmatpush1.bf16.msra.mxu1 %v5112_v9  ;;  %v5199_v8 = vld [vmem:[#allocation5 + $0x3e0] ss:$16 sps:$4 sm:$0xff]   ;;  %v5202_v9 = vld [vmem:[#allocation5 + $0x3e8] ss:$16 sps:$4 sm:$0xff]  }
  0xa1   :  { %3278 = vmatprep.subr.bf16.mxu0 %v5117_v11  ;;  %3622 = vmatprep.subr.bf16.mxu1 %v5120_v12  ;;  %v93_v11 = vld [vmem:[#allocation3 + $0x10] sm:$0xff] }
  0xa2   :  { %3308 = vmatprep.mubr.bf16.mxu0 %v126_v37  ;;  %3652 = vmatprep.mubr.bf16.mxu1 %v126_v37  ;;  %v109_v12 = vld [vmem:[#allocation3 + $0x90] sm:$0xff]  ;;  %v5240_v37 = vld [vmem:[#allocation5 + $0x4ac] ss:$16 sps:$4 sm:$0xff]  }
  0xa4   :  { %3279 = vmatpush1.bf16.msra.mxu0 %v5115_v13  ;;  %3623 = vmatpush1.bf16.msra.mxu1 %v5118_v14  ;;  %v5210_v13 = vld [vmem:[#allocation5 + $0x40c] ss:$16 sps:$4 sm:$0xff]   ;;  %v5205_v14 = vld [vmem:[#allocation5 + $0x400] ss:$16 sps:$4 sm:$0xff]  }
  0xa5   :  { %3280 = vmatprep.subr.bf16.mxu0 %v5123_v15  ;;  %3624 = vmatprep.subr.bf16.mxu1 %v5126_v16  ;;  %v5208_v15 = vld [vmem:[#allocation5 + $0x408] ss:$16 sps:$4 sm:$0xff]   ;;  %v125_v16 = vpack.c.bf16 %v109_v12, %v93_v11  ;;  %v5297_v12 = vld [vmem:[#allocation5 + $0x5e4] ss:$16 sps:$4 sm:$0xff]  }
  0xa6   :  { %v5292_v11 = vld [vmem:[#allocation5 + $0x5c8] ss:$16 sps:$4 sm:$0xff]  }
  0xa8   :  { %3281 = vmatpush1.bf16.msra.mxu0 %v5121_v17  ;;  %3625 = vmatpush1.bf16.msra.mxu1 %v5124_v18  ;;  %v5213_v17 = vld [vmem:[#allocation5 + $0x424] ss:$16 sps:$4 sm:$0xff]   ;;  %v5216_v18 = vld [vmem:[#allocation5 + $0x42c] ss:$16 sps:$4 sm:$0xff]  }
  0xa9   :  { %3282 = vmatprep.subr.bf16.mxu0 %v5129_v19  ;;  %3626 = vmatprep.subr.bf16.mxu1 %v5132_v20  ;;  %v96_v19 = vld [vmem:[#allocation3 + $0x28] sm:$0xff] }
  0xaa   :  { %v112_v20 = vld [vmem:[#allocation3 + $0xa8] sm:$0xff] }
  0xac   :  { %3283 = vmatpush1.bf16.msra.mxu0 %v5127_v21  ;;  %3627 = vmatpush1.bf16.msra.mxu1 %v5130_v22  ;;  %v5211_v21 = vld [vmem:[#allocation5 + $0x420] ss:$16 sps:$4 sm:$0xff]   ;;  %v5214_v22 = vld [vmem:[#allocation5 + $0x428] ss:$16 sps:$4 sm:$0xff]  }
  0xad   :  { %3284 = vmatprep.subr.bf16.mxu0 %v5135_v23  ;;  %3628 = vmatprep.subr.bf16.mxu1 %v5138_v24  ;;  %v128_v23 = vpack.c.bf16 %v112_v20, %v96_v19  ;;  %v5219_v24 = vld [vmem:[#allocation5 + $0x444] ss:$16 sps:$4 sm:$0xff]   ;;  %v5306_v19 = vld [vmem:[#allocation5 + $0x60c] ss:$16 sps:$4 sm:$0xff]   ;;  %v5301_v20 = vld [vmem:[#allocation5 + $0x600] ss:$16 sps:$4 sm:$0xff]  }
  0xb0   :  { %3285 = vmatpush1.bf16.msra.mxu0 %v5133_v25  ;;  %3629 = vmatpush1.bf16.msra.mxu1 %v5136_v26  ;;  %v5222_v25 = vld [vmem:[#allocation5 + $0x44c] ss:$16 sps:$4 sm:$0xff]   ;;  %v5217_v26 = vld [vmem:[#allocation5 + $0x440] ss:$16 sps:$4 sm:$0xff]  }
  0xb1   :  { %3286 = vmatprep.subr.bf16.mxu0 %v5141_v27  ;;  %3630 = vmatprep.subr.bf16.mxu1 %v5144_v28  ;;  %v5220_v27 = vld [vmem:[#allocation5 + $0x448] ss:$16 sps:$4 sm:$0xff]   ;;  %v5225_v28 = vld [vmem:[#allocation5 + $0x464] ss:$16 sps:$4 sm:$0xff]  }
  0xb4   :  { %3287 = vmatpush1.bf16.msra.mxu0 %v5139_v29  ;;  %3631 = vmatpush1.bf16.msra.mxu1 %v5142_v30  ;;  %v5228_v29 = vld [vmem:[#allocation5 + $0x46c] ss:$16 sps:$4 sm:$0xff]   ;;  %v5223_v30 = vld [vmem:[#allocation5 + $0x460] ss:$16 sps:$4 sm:$0xff]  }
  0xb5   :  { %3288 = vmatprep.subr.bf16.mxu0 %v5147_v31  ;;  %3632 = vmatprep.subr.bf16.mxu1 %v5150_v32  ;;  %v5226_v31 = vld [vmem:[#allocation5 + $0x468] ss:$16 sps:$4 sm:$0xff]   ;;  %v5231_v32 = vld [vmem:[#allocation5 + $0x484] ss:$16 sps:$4 sm:$0xff]  }
  0xb8   :  { %3289 = vmatpush1.bf16.msra.mxu0 %v5145_v35  ;;  %3633 = vmatpush1.bf16.msra.mxu1 %v5148_v36  ;;  %v5232_v35 = vld [vmem:[#allocation5 + $0x488] ss:$16 sps:$4 sm:$0xff]   ;;  %v5237_v36 = vld [vmem:[#allocation5 + $0x4a4] ss:$16 sps:$4 sm:$0xff]  }
  0xb9   :  { %3290 = vmatprep.subr.bf16.mxu0 %v5153_v38  ;;  %3634 = vmatprep.subr.bf16.mxu1 %v5156_v39  ;;  %v5235_v38 = vld [vmem:[#allocation5 + $0x4a0] ss:$16 sps:$4 sm:$0xff]   ;;  %v5238_v39 = vld [vmem:[#allocation5 + $0x4a8] ss:$16 sps:$4 sm:$0xff]  }
  0xbc   :  { %3291 = vmatpush1.bf16.msra.mxu0 %v5151_v40  ;;  %3635 = vmatpush1.bf16.msra.mxu1 %v5154_v41  ;;  %v5243_v40 = vld [vmem:[#allocation5 + $0x4c4] ss:$16 sps:$4 sm:$0xff]   ;;  %v5246_v41 = vld [vmem:[#allocation5 + $0x4cc] ss:$16 sps:$4 sm:$0xff]  }
  0xbd   :  { %3292 = vmatprep.subr.bf16.mxu0 %v5159_v42  ;;  %3636 = vmatprep.subr.bf16.mxu1 %v5162_v43  ;;  %v5241_v42 = vld [vmem:[#allocation5 + $0x4c0] ss:$16 sps:$4 sm:$0xff]   ;;  %v5244_v43 = vld [vmem:[#allocation5 + $0x4c8] ss:$16 sps:$4 sm:$0xff]  }
  0xc0   :  { %3293 = vmatpush1.bf16.msra.mxu0 %v5157_v44  ;;  %3637 = vmatpush1.bf16.msra.mxu1 %v5160_v45  ;;  %v5249_v44 = vld [vmem:[#allocation5 + $0x4e4] ss:$16 sps:$4 sm:$0xff]   ;;  %v5252_v45 = vld [vmem:[#allocation5 + $0x4ec] ss:$16 sps:$4 sm:$0xff]  }
  0xc1   :  { %3294 = vmatprep.subr.bf16.mxu0 %v5165_v46  ;;  %3638 = vmatprep.subr.bf16.mxu1 %v5168_v47  ;;  %v5247_v46 = vld [vmem:[#allocation5 + $0x4e0] ss:$16 sps:$4 sm:$0xff]   ;;  %v5250_v47 = vld [vmem:[#allocation5 + $0x4e8] ss:$16 sps:$4 sm:$0xff]  }
  0xc4   :  { %3295 = vmatpush1.bf16.msra.mxu0 %v5163_v48  ;;  %3639 = vmatpush1.bf16.msra.mxu1 %v5166_v49  ;;  %v5255_v48 = vld [vmem:[#allocation5 + $0x504] ss:$16 sps:$4 sm:$0xff]   ;;  %v5258_v49 = vld [vmem:[#allocation5 + $0x50c] ss:$16 sps:$4 sm:$0xff]  }
  0xc5   :  { %3296 = vmatprep.subr.bf16.mxu0 %v5171_v50  ;;  %3640 = vmatprep.subr.bf16.mxu1 %v5174_v51  ;;  %v5253_v50 = vld [vmem:[#allocation5 + $0x500] ss:$16 sps:$4 sm:$0xff]   ;;  %v5256_v51 = vld [vmem:[#allocation5 + $0x508] ss:$16 sps:$4 sm:$0xff]  }
  0xc8   :  { %3297 = vmatpush1.bf16.msra.mxu0 %v5169_v52  ;;  %3641 = vmatpush1.bf16.msra.mxu1 %v5172_v53  ;;  %v5261_v52 = vld [vmem:[#allocation5 + $0x524] ss:$16 sps:$4 sm:$0xff]   ;;  %v5264_v53 = vld [vmem:[#allocation5 + $0x52c] ss:$16 sps:$4 sm:$0xff]  }
  0xc9   :  { %3298 = vmatprep.subr.bf16.mxu0 %v5177_v54  ;;  %3642 = vmatprep.subr.bf16.mxu1 %v5180_v55  ;;  %v5259_v54 = vld [vmem:[#allocation5 + $0x520] ss:$16 sps:$4 sm:$0xff]   ;;  %v5262_v55 = vld [vmem:[#allocation5 + $0x528] ss:$16 sps:$4 sm:$0xff]  }
  0xcc   :  { %3299 = vmatpush1.bf16.msra.mxu0 %v5175_v56  ;;  %3643 = vmatpush1.bf16.msra.mxu1 %v5178_v57  ;;  %v5267_v56 = vld [vmem:[#allocation5 + $0x544] ss:$16 sps:$4 sm:$0xff]   ;;  %v5270_v57 = vld [vmem:[#allocation5 + $0x54c] ss:$16 sps:$4 sm:$0xff]  }
  0xcd   :  { %3300 = vmatprep.subr.bf16.mxu0 %v5183_v58  ;;  %3644 = vmatprep.subr.bf16.mxu1 %v5186_v59  ;;  %v5265_v58 = vld [vmem:[#allocation5 + $0x540] ss:$16 sps:$4 sm:$0xff]   ;;  %v5268_v59 = vld [vmem:[#allocation5 + $0x548] ss:$16 sps:$4 sm:$0xff]  }
  0xd0   :  { %3301 = vmatpush1.bf16.msra.mxu0 %v5181_v60  ;;  %3645 = vmatpush1.bf16.msra.mxu1 %v5184_v61  ;;  %v5273_v60 = vld [vmem:[#allocation5 + $0x564] ss:$16 sps:$4 sm:$0xff]   ;;  %v5276_v61 = vld [vmem:[#allocation5 + $0x56c] ss:$16 sps:$4 sm:$0xff]  }
  0xd1   :  { %3302 = vmatprep.subr.bf16.mxu0 %v5189_v62  ;;  %3646 = vmatprep.subr.bf16.mxu1 %v5192_v63  ;;  %v5271_v62 = vld [vmem:[#allocation5 + $0x560] ss:$16 sps:$4 sm:$0xff]   ;;  %v5274_v63 = vld [vmem:[#allocation5 + $0x568] ss:$16 sps:$4 sm:$0xff]  }
  0xd4   :  { %3303 = vmatpush1.bf16.msra.mxu0 %v5187_v0  ;;  %3647 = vmatpush1.bf16.msra.mxu1 %v5190_v1  ;;  %v5279_v0 = vld [vmem:[#allocation5 + $0x584] ss:$16 sps:$4 sm:$0xff]   ;;  %v5282_v1 = vld [vmem:[#allocation5 + $0x58c] ss:$16 sps:$4 sm:$0xff]  }
  0xd5   :  { %3304 = vmatprep.subr.bf16.mxu0 %v5195_v2  ;;  %3648 = vmatprep.subr.bf16.mxu1 %v5198_v3  ;;  %v5277_v2 = vld [vmem:[#allocation5 + $0x580] ss:$16 sps:$4 sm:$0xff]   ;;  %v5280_v3 = vld [vmem:[#allocation5 + $0x588] ss:$16 sps:$4 sm:$0xff]  }
  0xd8   :  { %3305 = vmatpush1.bf16.msra.mxu0 %v5193_v4  ;;  %3649 = vmatpush1.bf16.msra.mxu1 %v5196_v5  ;;  %v5285_v4 = vld [vmem:[#allocation5 + $0x5a4] ss:$16 sps:$4 sm:$0xff]   ;;  %v5288_v5 = vld [vmem:[#allocation5 + $0x5ac] ss:$16 sps:$4 sm:$0xff]  }
  0xd9   :  { %3306 = vmatprep.subr.bf16.mxu0 %v5201_v6  ;;  %3650 = vmatprep.subr.bf16.mxu1 %v5204_v7  ;;  %v5283_v6 = vld [vmem:[#allocation5 + $0x5a0] ss:$16 sps:$4 sm:$0xff]   ;;  %v5286_v7 = vld [vmem:[#allocation5 + $0x5a8] ss:$16 sps:$4 sm:$0xff]  }
  0xdc   :  { %3307 = vmatpush1.bf16.msra.mxu0 %v5199_v8  ;;  %3651 = vmatpush1.bf16.msra.mxu1 %v5202_v9  ;;  %v5291_v8 = vld [vmem:[#allocation5 + $0x5c4] ss:$16 sps:$4 sm:$0xff]   ;;  %v5294_v9 = vld [vmem:[#allocation5 + $0x5cc] ss:$16 sps:$4 sm:$0xff]  }
  0xdd   :  { %3319 = vmatprep.subr.bf16.mxu0 %v5207_v10  ;;  %3663 = vmatprep.subr.bf16.mxu1 %v5210_v13  ;;  %v5289_v10 = vld [vmem:[#allocation5 + $0x5c0] ss:$16 sps:$4 sm:$0xff]   ;;  %v5300_v13 = vld [vmem:[#allocation5 + $0x5ec] ss:$16 sps:$4 sm:$0xff]  }
  0xdf   :  { %3309 = vmatmul.mubr.bf16.vlgmr.msra.gmra.mrb[0].mxu0 %v125_v16  ;;  %3653 = vmatmul.mubr.bf16.vlgmr.msra.gmra.mrb[0].mxu1 %v125_v16  ;;  %v5303_v16 = vld [vmem:[#allocation5 + $0x604] ss:$16 sps:$4 sm:$0xff]  }
  0xe0   :  { %3320 = vmatpush1.bf16.msra.mxu0 %v5205_v14  ;;  %3664 = vmatpush1.bf16.msra.mxu1 %v5208_v15  ;;  %v5295_v14 = vld [vmem:[#allocation5 + $0x5e0] ss:$16 sps:$4 sm:$0xff]   ;;  %v5298_v15 = vld [vmem:[#allocation5 + $0x5e8] ss:$16 sps:$4 sm:$0xff]  }
  0xe1   :  { %3321 = vmatprep.subr.bf16.mxu0 %v5213_v17  ;;  %3665 = vmatprep.subr.bf16.mxu1 %v5216_v18  ;;  %v95_v17 = vld [vmem:[#allocation3 + $0x20] sm:$0xff] }
  0xe2   :  { %3351 = vmatprep.mubr.bf16.mxu0 %v128_v23  ;;  %3695 = vmatprep.mubr.bf16.mxu1 %v128_v23  ;;  %v111_v18 = vld [vmem:[#allocation3 + $0xa0] sm:$0xff]  ;;  %v98_v23 = vld [vmem:[#allocation3 + $0x38] sm:$0xff] }
  0xe4   :  { %3322 = vmatpush1.bf16.msra.mxu0 %v5211_v21  ;;  %3666 = vmatpush1.bf16.msra.mxu1 %v5214_v22  ;;  %v5304_v21 = vld [vmem:[#allocation5 + $0x608] ss:$16 sps:$4 sm:$0xff]   ;;  %v127_v22 = vpack.c.bf16 %v111_v18, %v95_v17  ;;  %v5393_v18 = vld [vmem:[#allocation5 + $0x7e4] ss:$16 sps:$4 sm:$0xff]  }
  0xe5   :  { %3323 = vmatprep.subr.bf16.mxu0 %v5219_v24  ;;  %3667 = vmatprep.subr.bf16.mxu1 %v5222_v25  ;;  %v114_v24 = vld [vmem:[#allocation3 + $0xb8] sm:$0xff]  ;;  %v5309_v25 = vld [vmem:[#allocation5 + $0x624] ss:$16 sps:$4 sm:$0xff]  }
  0xe6   :  { %v5388_v17 = vld [vmem:[#allocation5 + $0x7c8] ss:$16 sps:$4 sm:$0xff]  }
  0xe8   :  { %3324 = vmatpush1.bf16.msra.mxu0 %v5217_v26  ;;  %3668 = vmatpush1.bf16.msra.mxu1 %v5220_v27  ;;  %v5312_v26 = vld [vmem:[#allocation5 + $0x62c] ss:$16 sps:$4 sm:$0xff]   ;;  %v130_v27 = vpack.c.bf16 %v114_v24, %v98_v23  ;;  %v97_v23 = vld [vmem:[#allocation3 + $0x30] sm:$0xff] }
  0xe9   :  { %3325 = vmatprep.subr.bf16.mxu0 %v5225_v28  ;;  %3669 = vmatprep.subr.bf16.mxu1 %v5228_v29  ;;  %v5307_v28 = vld [vmem:[#allocation5 + $0x620] ss:$16 sps:$4 sm:$0xff]   ;;  %v5310_v29 = vld [vmem:[#allocation5 + $0x628] ss:$16 sps:$4 sm:$0xff]  }
  0xea   :  { %v113_v24 = vld [vmem:[#allocation3 + $0xb0] sm:$0xff] }
  0xec   :  { %3326 = vmatpush1.bf16.msra.mxu0 %v5223_v30  ;;  %3670 = vmatpush1.bf16.msra.mxu1 %v5226_v31  ;;  %v5315_v30 = vld [vmem:[#allocation5 + $0x644] ss:$16 sps:$4 sm:$0xff]   ;;  %v5318_v31 = vld [vmem:[#allocation5 + $0x64c] ss:$16 sps:$4 sm:$0xff]  }
  0xed   :  { %3327 = vmatprep.subr.bf16.mxu0 %v5231_v32  ;;  %3671 = vmatprep.subr.bf16.mxu1 %v5234_v33  ;;  %v5313_v32 = vld [vmem:[#allocation5 + $0x640] ss:$16 sps:$4 sm:$0xff]   ;;  %v5316_v33 = vld [vmem:[#allocation5 + $0x648] ss:$16 sps:$4 sm:$0xff]  }
  0xf0   :  { %3328 = vmatpush1.bf16.msra.mxu0 %v5229_v34  ;;  %3672 = vmatpush1.bf16.msra.mxu1 %v5232_v35  ;;  %v5321_v34 = vld [vmem:[#allocation5 + $0x664] ss:$16 sps:$4 sm:$0xff]   ;;  %v5324_v35 = vld [vmem:[#allocation5 + $0x66c] ss:$16 sps:$4 sm:$0xff]  }
  0xf1   :  { %3329 = vmatprep.subr.bf16.mxu0 %v5237_v36  ;;  %3673 = vmatprep.subr.bf16.mxu1 %v5240_v37  ;;  %v5319_v36 = vld [vmem:[#allocation5 + $0x660] ss:$16 sps:$4 sm:$0xff]   ;;  %v5322_v37 = vld [vmem:[#allocation5 + $0x668] ss:$16 sps:$4 sm:$0xff]  }
  0xf4   :  { %3330 = vmatpush1.bf16.msra.mxu0 %v5235_v38  ;;  %3674 = vmatpush1.bf16.msra.mxu1 %v5238_v39  ;;  %v5327_v38 = vld [vmem:[#allocation5 + $0x684] ss:$16 sps:$4 sm:$0xff]   ;;  %v5330_v39 = vld [vmem:[#allocation5 + $0x68c] ss:$16 sps:$4 sm:$0xff]  }
  0xf5   :  { %3331 = vmatprep.subr.bf16.mxu0 %v5243_v40  ;;  %3675 = vmatprep.subr.bf16.mxu1 %v5246_v41  ;;  %v5325_v40 = vld [vmem:[#allocation5 + $0x680] ss:$16 sps:$4 sm:$0xff]   ;;  %v5328_v41 = vld [vmem:[#allocation5 + $0x688] ss:$16 sps:$4 sm:$0xff]  }
  0xf8   :  { %3332 = vmatpush1.bf16.msra.mxu0 %v5241_v42  ;;  %3676 = vmatpush1.bf16.msra.mxu1 %v5244_v43  ;;  %v5333_v42 = vld [vmem:[#allocation5 + $0x6a4] ss:$16 sps:$4 sm:$0xff]   ;;  %v5336_v43 = vld [vmem:[#allocation5 + $0x6ac] ss:$16 sps:$4 sm:$0xff]  }
  0xf9   :  { %3333 = vmatprep.subr.bf16.mxu0 %v5249_v44  ;;  %3677 = vmatprep.subr.bf16.mxu1 %v5252_v45  ;;  %v5331_v44 = vld [vmem:[#allocation5 + $0x6a0] ss:$16 sps:$4 sm:$0xff]   ;;  %v5334_v45 = vld [vmem:[#allocation5 + $0x6a8] ss:$16 sps:$4 sm:$0xff]  }
  0xfc   :  { %3334 = vmatpush1.bf16.msra.mxu0 %v5247_v46  ;;  %3678 = vmatpush1.bf16.msra.mxu1 %v5250_v47  ;;  %v5339_v46 = vld [vmem:[#allocation5 + $0x6c4] ss:$16 sps:$4 sm:$0xff]   ;;  %v5342_v47 = vld [vmem:[#allocation5 + $0x6cc] ss:$16 sps:$4 sm:$0xff]  }
  0xfd   :  { %3335 = vmatprep.subr.bf16.mxu0 %v5255_v48  ;;  %3679 = vmatprep.subr.bf16.mxu1 %v5258_v49  ;;  %v5337_v48 = vld [vmem:[#allocation5 + $0x6c0] ss:$16 sps:$4 sm:$0xff]   ;;  %v5340_v49 = vld [vmem:[#allocation5 + $0x6c8] ss:$16 sps:$4 sm:$0xff]  }
 0x100   :  { %3336 = vmatpush1.bf16.msra.mxu0 %v5253_v50  ;;  %3680 = vmatpush1.bf16.msra.mxu1 %v5256_v51  ;;  %v5345_v50 = vld [vmem:[#allocation5 + $0x6e4] ss:$16 sps:$4 sm:$0xff]   ;;  %v5348_v51 = vld [vmem:[#allocation5 + $0x6ec] ss:$16 sps:$4 sm:$0xff]  }
 0x101   :  { %3337 = vmatprep.subr.bf16.mxu0 %v5261_v52  ;;  %3681 = vmatprep.subr.bf16.mxu1 %v5264_v53  ;;  %v5343_v52 = vld [vmem:[#allocation5 + $0x6e0] ss:$16 sps:$4 sm:$0xff]   ;;  %v5346_v53 = vld [vmem:[#allocation5 + $0x6e8] ss:$16 sps:$4 sm:$0xff]  }
 0x104   :  { %3338 = vmatpush1.bf16.msra.mxu0 %v5259_v54  ;;  %3682 = vmatpush1.bf16.msra.mxu1 %v5262_v55  ;;  %v5351_v54 = vld [vmem:[#allocation5 + $0x704] ss:$16 sps:$4 sm:$0xff]   ;;  %v5354_v55 = vld [vmem:[#allocation5 + $0x70c] ss:$16 sps:$4 sm:$0xff]  }
 0x105   :  { %3339 = vmatprep.subr.bf16.mxu0 %v5267_v56  ;;  %3683 = vmatprep.subr.bf16.mxu1 %v5270_v57  ;;  %v5349_v56 = vld [vmem:[#allocation5 + $0x700] ss:$16 sps:$4 sm:$0xff]   ;;  %v5352_v57 = vld [vmem:[#allocation5 + $0x708] ss:$16 sps:$4 sm:$0xff]  }
 0x108   :  { %3340 = vmatpush1.bf16.msra.mxu0 %v5265_v58  ;;  %3684 = vmatpush1.bf16.msra.mxu1 %v5268_v59  ;;  %v5357_v58 = vld [vmem:[#allocation5 + $0x724] ss:$16 sps:$4 sm:$0xff]   ;;  %v5360_v59 = vld [vmem:[#allocation5 + $0x72c] ss:$16 sps:$4 sm:$0xff]  }
 0x109   :  { %3341 = vmatprep.subr.bf16.mxu0 %v5273_v60  ;;  %3685 = vmatprep.subr.bf16.mxu1 %v5276_v61  ;;  %v5355_v60 = vld [vmem:[#allocation5 + $0x720] ss:$16 sps:$4 sm:$0xff]   ;;  %v5358_v61 = vld [vmem:[#allocation5 + $0x728] ss:$16 sps:$4 sm:$0xff]  }
 0x10c   :  { %3342 = vmatpush1.bf16.msra.mxu0 %v5271_v62  ;;  %3686 = vmatpush1.bf16.msra.mxu1 %v5274_v63  ;;  %v5363_v62 = vld [vmem:[#allocation5 + $0x744] ss:$16 sps:$4 sm:$0xff]   ;;  %v5366_v63 = vld [vmem:[#allocation5 + $0x74c] ss:$16 sps:$4 sm:$0xff]  }
 0x10d   :  { %3343 = vmatprep.subr.bf16.mxu0 %v5279_v0  ;;  %3687 = vmatprep.subr.bf16.mxu1 %v5282_v1  ;;  %v5361_v0 = vld [vmem:[#allocation5 + $0x740] ss:$16 sps:$4 sm:$0xff]   ;;  %v5364_v1 = vld [vmem:[#allocation5 + $0x748] ss:$16 sps:$4 sm:$0xff]  }
 0x110   :  { %3344 = vmatpush1.bf16.msra.mxu0 %v5277_v2  ;;  %3688 = vmatpush1.bf16.msra.mxu1 %v5280_v3  ;;  %v5369_v2 = vld [vmem:[#allocation5 + $0x764] ss:$16 sps:$4 sm:$0xff]   ;;  %v5372_v3 = vld [vmem:[#allocation5 + $0x76c] ss:$16 sps:$4 sm:$0xff]  }
 0x111   :  { %3345 = vmatprep.subr.bf16.mxu0 %v5285_v4  ;;  %3689 = vmatprep.subr.bf16.mxu1 %v5288_v5  ;;  %v5367_v4 = vld [vmem:[#allocation5 + $0x760] ss:$16 sps:$4 sm:$0xff]   ;;  %v5370_v5 = vld [vmem:[#allocation5 + $0x768] ss:$16 sps:$4 sm:$0xff]  }
 0x114   :  { %3346 = vmatpush1.bf16.msra.mxu0 %v5283_v6  ;;  %3690 = vmatpush1.bf16.msra.mxu1 %v5286_v7  ;;  %v5375_v6 = vld [vmem:[#allocation5 + $0x784] ss:$16 sps:$4 sm:$0xff]   ;;  %v5378_v7 = vld [vmem:[#allocation5 + $0x78c] ss:$16 sps:$4 sm:$0xff]  }
 0x115   :  { %3347 = vmatprep.subr.bf16.mxu0 %v5291_v8  ;;  %3691 = vmatprep.subr.bf16.mxu1 %v5294_v9  ;;  %v5373_v8 = vld [vmem:[#allocation5 + $0x780] ss:$16 sps:$4 sm:$0xff]   ;;  %v5376_v9 = vld [vmem:[#allocation5 + $0x788] ss:$16 sps:$4 sm:$0xff]  }
 0x118   :  { %3348 = vmatpush1.bf16.msra.mxu0 %v5289_v10  ;;  %3692 = vmatpush1.bf16.msra.mxu1 %v5292_v11  ;;  %v5381_v10 = vld [vmem:[#allocation5 + $0x7a4] ss:$16 sps:$4 sm:$0xff]   ;;  %v5384_v11 = vld [vmem:[#allocation5 + $0x7ac] ss:$16 sps:$4 sm:$0xff]  }
 0x119   :  { %3349 = vmatprep.subr.bf16.mxu0 %v5297_v12  ;;  %3693 = vmatprep.subr.bf16.mxu1 %v5300_v13  ;;  %v5379_v12 = vld [vmem:[#allocation5 + $0x7a0] ss:$16 sps:$4 sm:$0xff]   ;;  %v5382_v13 = vld [vmem:[#allocation5 + $0x7a8] ss:$16 sps:$4 sm:$0xff]  }
 0x11c   :  { %3350 = vmatpush1.bf16.msra.mxu0 %v5295_v14  ;;  %3694 = vmatpush1.bf16.msra.mxu1 %v5298_v15  ;;  %v5387_v14 = vld [vmem:[#allocation5 + $0x7c4] ss:$16 sps:$4 sm:$0xff]   ;;  %v5390_v15 = vld [vmem:[#allocation5 + $0x7cc] ss:$16 sps:$4 sm:$0xff]  }
 0x11d   :  { %3362 = vmatprep.subr.bf16.mxu0 %v5303_v16  ;;  %3706 = vmatprep.subr.bf16.mxu1 %v5306_v19  ;;  %v5385_v16 = vld [vmem:[#allocation5 + $0x7c0] ss:$16 sps:$4 sm:$0xff]   ;;  %v5396_v19 = vld [vmem:[#allocation5 + $0x7ec] ss:$16 sps:$4 sm:$0xff]  }
 0x11f   :  { %3352 = vmatmul.mubr.bf16.vlgmr.msra.gmra.mrb[0].mxu0 %v127_v22  ;;  %3696 = vmatmul.mubr.bf16.vlgmr.msra.gmra.mrb[0].mxu1 %v127_v22  ;;  %v5399_v22 = vld [vmem:[#allocation5 + $0x804] ss:$16 sps:$4 sm:$0xff]  }
 0x120   :  { %3363 = vmatpush1.bf16.msra.mxu0 %v5301_v20  ;;  %3707 = vmatpush1.bf16.msra.mxu1 %v5304_v21  ;;  %v5391_v20 = vld [vmem:[#allocation5 + $0x7e0] ss:$16 sps:$4 sm:$0xff]   ;;  %v5394_v21 = vld [vmem:[#allocation5 + $0x7e8] ss:$16 sps:$4 sm:$0xff]  }
 0x121   :  { %3364 = vmatprep.subr.bf16.mxu0 %v5309_v25  ;;  %3708 = vmatprep.subr.bf16.mxu1 %v5312_v26  ;;  %v5402_v25 = vld [vmem:[#allocation5 + $0x80c] ss:$16 sps:$4 sm:$0xff]   ;;  %v5397_v26 = vld [vmem:[#allocation5 + $0x800] ss:$16 sps:$4 sm:$0xff]  }
 0x122   :  { %3394 = vmatprep.mubr.bf16.mxu0 %v130_v27  ;;  %3738 = vmatprep.mubr.bf16.mxu1 %v130_v27  ;;  %v5400_v27 = vld [vmem:[#allocation5 + $0x808] ss:$16 sps:$4 sm:$0xff]  }
 0x124   :  { %3365 = vmatpush1.bf16.msra.mxu0 %v5307_v28  ;;  %3709 = vmatpush1.bf16.msra.mxu1 %v5310_v29  ;;  %v129_v28 = vpack.c.bf16 %v113_v24, %v97_v23  ;;  %v100_v29 = vld [vmem:[#allocation3 + $0x48] sm:$0xff]  ;;  %v5489_v24 = vld [vmem:[#allocation5 + $0x9e4] ss:$16 sps:$4 sm:$0xff]  }
 0x125   :  { %3366 = vmatprep.subr.bf16.mxu0 %v5315_v30  ;;  %3710 = vmatprep.subr.bf16.mxu1 %v5318_v31  ;;  %v116_v30 = vld [vmem:[#allocation3 + $0xc8] sm:$0xff]  ;;  %v5405_v31 = vld [vmem:[#allocation5 + $0x824] ss:$16 sps:$4 sm:$0xff]  }
 0x126   :  { %v5484_v23 = vld [vmem:[#allocation5 + $0x9c8] ss:$16 sps:$4 sm:$0xff]  }
 0x128   :  { %3367 = vmatpush1.bf16.msra.mxu0 %v5313_v32  ;;  %3711 = vmatpush1.bf16.msra.mxu1 %v5316_v33  ;;  %v5408_v32 = vld [vmem:[#allocation5 + $0x82c] ss:$16 sps:$4 sm:$0xff]   ;;  %v132_v33 = vpack.c.bf16 %v116_v30, %v100_v29  ;;  %v99_v30 = vld [vmem:[#allocation3 + $0x40] sm:$0xff] }
 0x129   :  { %3368 = vmatprep.subr.bf16.mxu0 %v5321_v34  ;;  %3712 = vmatprep.subr.bf16.mxu1 %v5324_v35  ;;  %v5403_v34 = vld [vmem:[#allocation5 + $0x820] ss:$16 sps:$4 sm:$0xff]   ;;  %v5406_v35 = vld [vmem:[#allocation5 + $0x828] ss:$16 sps:$4 sm:$0xff]   ;;  %v5498_v29 = vld [vmem:[#allocation5 + $0xa0c] ss:$16 sps:$4 sm:$0xff]  }
 0x12c   :  { %3369 = vmatpush1.bf16.msra.mxu0 %v5319_v36  ;;  %3713 = vmatpush1.bf16.msra.mxu1 %v5322_v37  ;;  %v5411_v36 = vld [vmem:[#allocation5 + $0x844] ss:$16 sps:$4 sm:$0xff]   ;;  %v5414_v37 = vld [vmem:[#allocation5 + $0x84c] ss:$16 sps:$4 sm:$0xff]  }
 0x12d   :  { %3370 = vmatprep.subr.bf16.mxu0 %v5327_v38  ;;  %3714 = vmatprep.subr.bf16.mxu1 %v5330_v39  ;;  %v5409_v38 = vld [vmem:[#allocation5 + $0x840] ss:$16 sps:$4 sm:$0xff]   ;;  %v5412_v39 = vld [vmem:[#allocation5 + $0x848] ss:$16 sps:$4 sm:$0xff]  }
 0x130   :  { %3371 = vmatpush1.bf16.msra.mxu0 %v5325_v40  ;;  %3715 = vmatpush1.bf16.msra.mxu1 %v5328_v41  ;;  %v5417_v40 = vld [vmem:[#allocation5 + $0x864] ss:$16 sps:$4 sm:$0xff]   ;;  %v5420_v41 = vld [vmem:[#allocation5 + $0x86c] ss:$16 sps:$4 sm:$0xff]  }
 0x131   :  { %3372 = vmatprep.subr.bf16.mxu0 %v5333_v42  ;;  %3716 = vmatprep.subr.bf16.mxu1 %v5336_v43  ;;  %v5415_v42 = vld [vmem:[#allocation5 + $0x860] ss:$16 sps:$4 sm:$0xff]   ;;  %v5418_v43 = vld [vmem:[#allocation5 + $0x868] ss:$16 sps:$4 sm:$0xff]  }
 0x134   :  { %3373 = vmatpush1.bf16.msra.mxu0 %v5331_v44  ;;  %3717 = vmatpush1.bf16.msra.mxu1 %v5334_v45  ;;  %v5423_v44 = vld [vmem:[#allocation5 + $0x884] ss:$16 sps:$4 sm:$0xff]   ;;  %v5426_v45 = vld [vmem:[#allocation5 + $0x88c] ss:$16 sps:$4 sm:$0xff]  }
 0x135   :  { %3374 = vmatprep.subr.bf16.mxu0 %v5339_v46  ;;  %3718 = vmatprep.subr.bf16.mxu1 %v5342_v47  ;;  %v5421_v46 = vld [vmem:[#allocation5 + $0x880] ss:$16 sps:$4 sm:$0xff]   ;;  %v5424_v47 = vld [vmem:[#allocation5 + $0x888] ss:$16 sps:$4 sm:$0xff]  }
 0x138   :  { %3375 = vmatpush1.bf16.msra.mxu0 %v5337_v48  ;;  %3719 = vmatpush1.bf16.msra.mxu1 %v5340_v49  ;;  %v5429_v48 = vld [vmem:[#allocation5 + $0x8a4] ss:$16 sps:$4 sm:$0xff]   ;;  %v5432_v49 = vld [vmem:[#allocation5 + $0x8ac] ss:$16 sps:$4 sm:$0xff]  }
 0x139   :  { %3376 = vmatprep.subr.bf16.mxu0 %v5345_v50  ;;  %3720 = vmatprep.subr.bf16.mxu1 %v5348_v51  ;;  %v5427_v50 = vld [vmem:[#allocation5 + $0x8a0] ss:$16 sps:$4 sm:$0xff]   ;;  %v5430_v51 = vld [vmem:[#allocation5 + $0x8a8] ss:$16 sps:$4 sm:$0xff]  }
 0x13c   :  { %3377 = vmatpush1.bf16.msra.mxu0 %v5343_v52  ;;  %3721 = vmatpush1.bf16.msra.mxu1 %v5346_v53  ;;  %v5435_v52 = vld [vmem:[#allocation5 + $0x8c4] ss:$16 sps:$4 sm:$0xff]   ;;  %v5438_v53 = vld [vmem:[#allocation5 + $0x8cc] ss:$16 sps:$4 sm:$0xff]  }
 0x13d   :  { %3378 = vmatprep.subr.bf16.mxu0 %v5351_v54  ;;  %3722 = vmatprep.subr.bf16.mxu1 %v5354_v55  ;;  %v5433_v54 = vld [vmem:[#allocation5 + $0x8c0] ss:$16 sps:$4 sm:$0xff]   ;;  %v5436_v55 = vld [vmem:[#allocation5 + $0x8c8] ss:$16 sps:$4 sm:$0xff]  }
 0x140   :  { %3379 = vmatpush1.bf16.msra.mxu0 %v5349_v56  ;;  %3723 = vmatpush1.bf16.msra.mxu1 %v5352_v57  ;;  %v5441_v56 = vld [vmem:[#allocation5 + $0x8e4] ss:$16 sps:$4 sm:$0xff]   ;;  %v5444_v57 = vld [vmem:[#allocation5 + $0x8ec] ss:$16 sps:$4 sm:$0xff]  }
 0x141   :  { %3380 = vmatprep.subr.bf16.mxu0 %v5357_v58  ;;  %3724 = vmatprep.subr.bf16.mxu1 %v5360_v59  ;;  %v5439_v58 = vld [vmem:[#allocation5 + $0x8e0] ss:$16 sps:$4 sm:$0xff]   ;;  %v5442_v59 = vld [vmem:[#allocation5 + $0x8e8] ss:$16 sps:$4 sm:$0xff]  }
 0x144   :  { %3381 = vmatpush1.bf16.msra.mxu0 %v5355_v60  ;;  %3725 = vmatpush1.bf16.msra.mxu1 %v5358_v61  ;;  %v5447_v60 = vld [vmem:[#allocation5 + $0x904] ss:$16 sps:$4 sm:$0xff]   ;;  %v5450_v61 = vld [vmem:[#allocation5 + $0x90c] ss:$16 sps:$4 sm:$0xff]  }
 0x145   :  { %3382 = vmatprep.subr.bf16.mxu0 %v5363_v62  ;;  %3726 = vmatprep.subr.bf16.mxu1 %v5366_v63  ;;  %v5445_v62 = vld [vmem:[#allocation5 + $0x900] ss:$16 sps:$4 sm:$0xff]   ;;  %v5448_v63 = vld [vmem:[#allocation5 + $0x908] ss:$16 sps:$4 sm:$0xff]  }
 0x148   :  { %3383 = vmatpush1.bf16.msra.mxu0 %v5361_v0  ;;  %3727 = vmatpush1.bf16.msra.mxu1 %v5364_v1  ;;  %v5453_v0 = vld [vmem:[#allocation5 + $0x924] ss:$16 sps:$4 sm:$0xff]   ;;  %v5456_v1 = vld [vmem:[#allocation5 + $0x92c] ss:$16 sps:$4 sm:$0xff]  }
 0x149   :  { %3384 = vmatprep.subr.bf16.mxu0 %v5369_v2  ;;  %3728 = vmatprep.subr.bf16.mxu1 %v5372_v3  ;;  %v5451_v2 = vld [vmem:[#allocation5 + $0x920] ss:$16 sps:$4 sm:$0xff]   ;;  %v5454_v3 = vld [vmem:[#allocation5 + $0x928] ss:$16 sps:$4 sm:$0xff]  }
 0x14c   :  { %3385 = vmatpush1.bf16.msra.mxu0 %v5367_v4  ;;  %3729 = vmatpush1.bf16.msra.mxu1 %v5370_v5  ;;  %v5459_v4 = vld [vmem:[#allocation5 + $0x944] ss:$16 sps:$4 sm:$0xff]   ;;  %v5462_v5 = vld [vmem:[#allocation5 + $0x94c] ss:$16 sps:$4 sm:$0xff]  }
 0x14d   :  { %3386 = vmatprep.subr.bf16.mxu0 %v5375_v6  ;;  %3730 = vmatprep.subr.bf16.mxu1 %v5378_v7  ;;  %v5457_v6 = vld [vmem:[#allocation5 + $0x940] ss:$16 sps:$4 sm:$0xff]   ;;  %v5460_v7 = vld [vmem:[#allocation5 + $0x948] ss:$16 sps:$4 sm:$0xff]  }
 0x150   :  { %3387 = vmatpush1.bf16.msra.mxu0 %v5373_v8  ;;  %3731 = vmatpush1.bf16.msra.mxu1 %v5376_v9  ;;  %v5465_v8 = vld [vmem:[#allocation5 + $0x964] ss:$16 sps:$4 sm:$0xff]   ;;  %v5468_v9 = vld [vmem:[#allocation5 + $0x96c] ss:$16 sps:$4 sm:$0xff]  }
 0x151   :  { %3388 = vmatprep.subr.bf16.mxu0 %v5381_v10  ;;  %3732 = vmatprep.subr.bf16.mxu1 %v5384_v11  ;;  %v5463_v10 = vld [vmem:[#allocation5 + $0x960] ss:$16 sps:$4 sm:$0xff]   ;;  %v5466_v11 = vld [vmem:[#allocation5 + $0x968] ss:$16 sps:$4 sm:$0xff]  }
 0x154   :  { %3389 = vmatpush1.bf16.msra.mxu0 %v5379_v12  ;;  %3733 = vmatpush1.bf16.msra.mxu1 %v5382_v13  ;;  %v5471_v12 = vld [vmem:[#allocation5 + $0x984] ss:$16 sps:$4 sm:$0xff]   ;;  %v5474_v13 = vld [vmem:[#allocation5 + $0x98c] ss:$16 sps:$4 sm:$0xff]  }
 0x155   :  { %3390 = vmatprep.subr.bf16.mxu0 %v5387_v14  ;;  %3734 = vmatprep.subr.bf16.mxu1 %v5390_v15  ;;  %v5469_v14 = vld [vmem:[#allocation5 + $0x980] ss:$16 sps:$4 sm:$0xff]   ;;  %v5472_v15 = vld [vmem:[#allocation5 + $0x988] ss:$16 sps:$4 sm:$0xff]  }
 0x158   :  { %3391 = vmatpush1.bf16.msra.mxu0 %v5385_v16  ;;  %3735 = vmatpush1.bf16.msra.mxu1 %v5388_v17  ;;  %v5477_v16 = vld [vmem:[#allocation5 + $0x9a4] ss:$16 sps:$4 sm:$0xff]   ;;  %v5480_v17 = vld [vmem:[#allocation5 + $0x9ac] ss:$16 sps:$4 sm:$0xff]  }
 0x159   :  { %3392 = vmatprep.subr.bf16.mxu0 %v5393_v18  ;;  %3736 = vmatprep.subr.bf16.mxu1 %v5396_v19  ;;  %v5475_v18 = vld [vmem:[#allocation5 + $0x9a0] ss:$16 sps:$4 sm:$0xff]   ;;  %v5478_v19 = vld [vmem:[#allocation5 + $0x9a8] ss:$16 sps:$4 sm:$0xff]  }
 0x15c   :  { %3393 = vmatpush1.bf16.msra.mxu0 %v5391_v20  ;;  %3737 = vmatpush1.bf16.msra.mxu1 %v5394_v21  ;;  %v5483_v20 = vld [vmem:[#allocation5 + $0x9c4] ss:$16 sps:$4 sm:$0xff]   ;;  %v5486_v21 = vld [vmem:[#allocation5 + $0x9cc] ss:$16 sps:$4 sm:$0xff]  }
 0x15d   :  { %3405 = vmatprep.subr.bf16.mxu0 %v5399_v22  ;;  %3749 = vmatprep.subr.bf16.mxu1 %v5402_v25  ;;  %v5481_v22 = vld [vmem:[#allocation5 + $0x9c0] ss:$16 sps:$4 sm:$0xff]   ;;  %v5492_v25 = vld [vmem:[#allocation5 + $0x9ec] ss:$16 sps:$4 sm:$0xff]  }
 0x15f   :  { %3395 = vmatmul.mubr.bf16.vlgmr.msra.gmra.mrb[0].mxu0 %v129_v28  ;;  %3739 = vmatmul.mubr.bf16.vlgmr.msra.gmra.mrb[0].mxu1 %v129_v28  ;;  %v5495_v28 = vld [vmem:[#allocation5 + $0xa04] ss:$16 sps:$4 sm:$0xff]  }
 0x160   :  { %3406 = vmatpush1.bf16.msra.mxu0 %v5397_v26  ;;  %3750 = vmatpush1.bf16.msra.mxu1 %v5400_v27  ;;  %v5487_v26 = vld [vmem:[#allocation5 + $0x9e0] ss:$16 sps:$4 sm:$0xff]   ;;  %v5490_v27 = vld [vmem:[#allocation5 + $0x9e8] ss:$16 sps:$4 sm:$0xff]  }
 0x161   :  { %3407 = vmatprep.subr.bf16.mxu0 %v5405_v31  ;;  %3751 = vmatprep.subr.bf16.mxu1 %v5408_v32  ;;  %v115_v31 = vld [vmem:[#allocation3 + $0xc0] sm:$0xff]  ;;  %v102_v32 = vld [vmem:[#allocation3 + $0x58] sm:$0xff] }
 0x162   :  { %3437 = vmatprep.mubr.bf16.mxu0 %v132_v33  ;;  %3781 = vmatprep.mubr.bf16.mxu1 %v132_v33  ;;  %v118_v33 = vld [vmem:[#allocation3 + $0xd8] sm:$0xff] }
 0x164   :  { %3408 = vmatpush1.bf16.msra.mxu0 %v5403_v34  ;;  %3752 = vmatpush1.bf16.msra.mxu1 %v5406_v35  ;;  %v131_v34 = vpack.c.bf16 %v115_v31, %v99_v30  ;;  %v5493_v35 = vld [vmem:[#allocation5 + $0xa00] ss:$16 sps:$4 sm:$0xff]   ;;  %v5585_v30 = vld [vmem:[#allocation5 + $0xbe4] ss:$16 sps:$4 sm:$0xff]   ;;  %v5588_v31 = vld [vmem:[#allocation5 + $0xbec] ss:$16 sps:$4 sm:$0xff]  }
 0x165   :  { %3409 = vmatprep.subr.bf16.mxu0 %v5411_v36  ;;  %3753 = vmatprep.subr.bf16.mxu1 %v5414_v37  ;;  %v5496_v36 = vld [vmem:[#allocation5 + $0xa08] ss:$16 sps:$4 sm:$0xff]   ;;  %v5501_v37 = vld [vmem:[#allocation5 + $0xa24] ss:$16 sps:$4 sm:$0xff]  }
 0x168   :  { %3410 = vmatpush1.bf16.msra.mxu0 %v5409_v38  ;;  %3754 = vmatpush1.bf16.msra.mxu1 %v5412_v39  ;;  %v5504_v38 = vld [vmem:[#allocation5 + $0xa2c] ss:$16 sps:$4 sm:$0xff]   ;;  %v134_v39 = vpack.c.bf16 %v118_v33, %v102_v32  ;;  %v5583_v32 = vld [vmem:[#allocation5 + $0xbe0] ss:$16 sps:$4 sm:$0xff]   ;;  %v5586_v33 = vld [vmem:[#allocation5 + $0xbe8] ss:$16 sps:$4 sm:$0xff]  }
 0x169   :  { %3411 = vmatprep.subr.bf16.mxu0 %v5417_v40  ;;  %3755 = vmatprep.subr.bf16.mxu1 %v5420_v41  ;;  %v5499_v40 = vld [vmem:[#allocation5 + $0xa20] ss:$16 sps:$4 sm:$0xff]   ;;  %v5502_v41 = vld [vmem:[#allocation5 + $0xa28] ss:$16 sps:$4 sm:$0xff]  }
 0x16c   :  { %3412 = vmatpush1.bf16.msra.mxu0 %v5415_v42  ;;  %3756 = vmatpush1.bf16.msra.mxu1 %v5418_v43  ;;  %v5507_v42 = vld [vmem:[#allocation5 + $0xa44] ss:$16 sps:$4 sm:$0xff]   ;;  %v5510_v43 = vld [vmem:[#allocation5 + $0xa4c] ss:$16 sps:$4 sm:$0xff]  }
 0x16d   :  { %3413 = vmatprep.subr.bf16.mxu0 %v5423_v44  ;;  %3757 = vmatprep.subr.bf16.mxu1 %v5426_v45  ;;  %v5505_v44 = vld [vmem:[#allocation5 + $0xa40] ss:$16 sps:$4 sm:$0xff]   ;;  %v5508_v45 = vld [vmem:[#allocation5 + $0xa48] ss:$16 sps:$4 sm:$0xff]  }
 0x170   :  { %3414 = vmatpush1.bf16.msra.mxu0 %v5421_v46  ;;  %3758 = vmatpush1.bf16.msra.mxu1 %v5424_v47  ;;  %v5513_v46 = vld [vmem:[#allocation5 + $0xa64] ss:$16 sps:$4 sm:$0xff]   ;;  %v5516_v47 = vld [vmem:[#allocation5 + $0xa6c] ss:$16 sps:$4 sm:$0xff]  }
 0x171   :  { %3415 = vmatprep.subr.bf16.mxu0 %v5429_v48  ;;  %3759 = vmatprep.subr.bf16.mxu1 %v5432_v49  ;;  %v5511_v48 = vld [vmem:[#allocation5 + $0xa60] ss:$16 sps:$4 sm:$0xff]   ;;  %v5514_v49 = vld [vmem:[#allocation5 + $0xa68] ss:$16 sps:$4 sm:$0xff]  }
 0x174   :  { %3416 = vmatpush1.bf16.msra.mxu0 %v5427_v50  ;;  %3760 = vmatpush1.bf16.msra.mxu1 %v5430_v51  ;;  %v5519_v50 = vld [vmem:[#allocation5 + $0xa84] ss:$16 sps:$4 sm:$0xff]   ;;  %v5522_v51 = vld [vmem:[#allocation5 + $0xa8c] ss:$16 sps:$4 sm:$0xff]  }
 0x175   :  { %3417 = vmatprep.subr.bf16.mxu0 %v5435_v52  ;;  %3761 = vmatprep.subr.bf16.mxu1 %v5438_v53  ;;  %v5517_v52 = vld [vmem:[#allocation5 + $0xa80] ss:$16 sps:$4 sm:$0xff]   ;;  %v5520_v53 = vld [vmem:[#allocation5 + $0xa88] ss:$16 sps:$4 sm:$0xff]  }
 0x178   :  { %3418 = vmatpush1.bf16.msra.mxu0 %v5433_v54  ;;  %3762 = vmatpush1.bf16.msra.mxu1 %v5436_v55  ;;  %v5525_v54 = vld [vmem:[#allocation5 + $0xaa4] ss:$16 sps:$4 sm:$0xff]   ;;  %v5528_v55 = vld [vmem:[#allocation5 + $0xaac] ss:$16 sps:$4 sm:$0xff]  }
 0x179   :  { %3419 = vmatprep.subr.bf16.mxu0 %v5441_v56  ;;  %3763 = vmatprep.subr.bf16.mxu1 %v5444_v57  ;;  %v5523_v56 = vld [vmem:[#allocation5 + $0xaa0] ss:$16 sps:$4 sm:$0xff]   ;;  %v5526_v57 = vld [vmem:[#allocation5 + $0xaa8] ss:$16 sps:$4 sm:$0xff]  }
 0x17c   :  { %3420 = vmatpush1.bf16.msra.mxu0 %v5439_v58  ;;  %3764 = vmatpush1.bf16.msra.mxu1 %v5442_v59  ;;  %v5531_v58 = vld [vmem:[#allocation5 + $0xac4] ss:$16 sps:$4 sm:$0xff]   ;;  %v5534_v59 = vld [vmem:[#allocation5 + $0xacc] ss:$16 sps:$4 sm:$0xff]  }
 0x17d   :  { %3421 = vmatprep.subr.bf16.mxu0 %v5447_v60  ;;  %3765 = vmatprep.subr.bf16.mxu1 %v5450_v61  ;;  %v5529_v60 = vld [vmem:[#allocation5 + $0xac0] ss:$16 sps:$4 sm:$0xff]   ;;  %v5532_v61 = vld [vmem:[#allocation5 + $0xac8] ss:$16 sps:$4 sm:$0xff]  }
 0x180   :  { %3422 = vmatpush1.bf16.msra.mxu0 %v5445_v62  ;;  %3766 = vmatpush1.bf16.msra.mxu1 %v5448_v63  ;;  %v5537_v62 = vld [vmem:[#allocation5 + $0xae4] ss:$16 sps:$4 sm:$0xff]   ;;  %v5540_v63 = vld [vmem:[#allocation5 + $0xaec] ss:$16 sps:$4 sm:$0xff]  }
 0x181   :  { %3423 = vmatprep.subr.bf16.mxu0 %v5453_v0  ;;  %3767 = vmatprep.subr.bf16.mxu1 %v5456_v1  ;;  %v5535_v0 = vld [vmem:[#allocation5 + $0xae0] ss:$16 sps:$4 sm:$0xff]   ;;  %v5538_v1 = vld [vmem:[#allocation5 + $0xae8] ss:$16 sps:$4 sm:$0xff]  }
 0x184   :  { %3424 = vmatpush1.bf16.msra.mxu0 %v5451_v2  ;;  %3768 = vmatpush1.bf16.msra.mxu1 %v5454_v3  ;;  %v5543_v2 = vld [vmem:[#allocation5 + $0xb04] ss:$16 sps:$4 sm:$0xff]   ;;  %v5546_v3 = vld [vmem:[#allocation5 + $0xb0c] ss:$16 sps:$4 sm:$0xff]  }
 0x185   :  { %3425 = vmatprep.subr.bf16.mxu0 %v5459_v4  ;;  %3769 = vmatprep.subr.bf16.mxu1 %v5462_v5  ;;  %v5541_v4 = vld [vmem:[#allocation5 + $0xb00] ss:$16 sps:$4 sm:$0xff]   ;;  %v5544_v5 = vld [vmem:[#allocation5 + $0xb08] ss:$16 sps:$4 sm:$0xff]  }
 0x188   :  { %3426 = vmatpush1.bf16.msra.mxu0 %v5457_v6  ;;  %3770 = vmatpush1.bf16.msra.mxu1 %v5460_v7  ;;  %v5549_v6 = vld [vmem:[#allocation5 + $0xb24] ss:$16 sps:$4 sm:$0xff]   ;;  %v5552_v7 = vld [vmem:[#allocation5 + $0xb2c] ss:$16 sps:$4 sm:$0xff]  }
 0x189   :  { %3427 = vmatprep.subr.bf16.mxu0 %v5465_v8  ;;  %3771 = vmatprep.subr.bf16.mxu1 %v5468_v9  ;;  %v5547_v8 = vld [vmem:[#allocation5 + $0xb20] ss:$16 sps:$4 sm:$0xff]   ;;  %v5550_v9 = vld [vmem:[#allocation5 + $0xb28] ss:$16 sps:$4 sm:$0xff]  }
 0x18c   :  { %3428 = vmatpush1.bf16.msra.mxu0 %v5463_v10  ;;  %3772 = vmatpush1.bf16.msra.mxu1 %v5466_v11  ;;  %v5555_v10 = vld [vmem:[#allocation5 + $0xb44] ss:$16 sps:$4 sm:$0xff]   ;;  %v5558_v11 = vld [vmem:[#allocation5 + $0xb4c] ss:$16 sps:$4 sm:$0xff]  }
 0x18d   :  { %3429 = vmatprep.subr.bf16.mxu0 %v5471_v12  ;;  %3773 = vmatprep.subr.bf16.mxu1 %v5474_v13  ;;  %v5553_v12 = vld [vmem:[#allocation5 + $0xb40] ss:$16 sps:$4 sm:$0xff]   ;;  %v5556_v13 = vld [vmem:[#allocation5 + $0xb48] ss:$16 sps:$4 sm:$0xff]  }
 0x190   :  { %3430 = vmatpush1.bf16.msra.mxu0 %v5469_v14  ;;  %3774 = vmatpush1.bf16.msra.mxu1 %v5472_v15  ;;  %v5561_v14 = vld [vmem:[#allocation5 + $0xb64] ss:$16 sps:$4 sm:$0xff]   ;;  %v5564_v15 = vld [vmem:[#allocation5 + $0xb6c] ss:$16 sps:$4 sm:$0xff]  }
 0x191   :  { %3431 = vmatprep.subr.bf16.mxu0 %v5477_v16  ;;  %3775 = vmatprep.subr.bf16.mxu1 %v5480_v17  ;;  %v5559_v16 = vld [vmem:[#allocation5 + $0xb60] ss:$16 sps:$4 sm:$0xff]   ;;  %v5562_v17 = vld [vmem:[#allocation5 + $0xb68] ss:$16 sps:$4 sm:$0xff]  }
 0x194   :  { %3432 = vmatpush1.bf16.msra.mxu0 %v5475_v18  ;;  %3776 = vmatpush1.bf16.msra.mxu1 %v5478_v19  ;;  %v5567_v18 = vld [vmem:[#allocation5 + $0xb84] ss:$16 sps:$4 sm:$0xff]   ;;  %v5570_v19 = vld [vmem:[#allocation5 + $0xb8c] ss:$16 sps:$4 sm:$0xff]  }
 0x195   :  { %3433 = vmatprep.subr.bf16.mxu0 %v5483_v20  ;;  %3777 = vmatprep.subr.bf16.mxu1 %v5486_v21  ;;  %v5565_v20 = vld [vmem:[#allocation5 + $0xb80] ss:$16 sps:$4 sm:$0xff]   ;;  %v5568_v21 = vld [vmem:[#allocation5 + $0xb88] ss:$16 sps:$4 sm:$0xff]  }
 0x198   :  { %3434 = vmatpush1.bf16.msra.mxu0 %v5481_v22  ;;  %3778 = vmatpush1.bf16.msra.mxu1 %v5484_v23  ;;  %v5573_v22 = vld [vmem:[#allocation5 + $0xba4] ss:$16 sps:$4 sm:$0xff]   ;;  %v5576_v23 = vld [vmem:[#allocation5 + $0xbac] ss:$16 sps:$4 sm:$0xff]  }
 0x199   :  { %3435 = vmatprep.subr.bf16.mxu0 %v5489_v24  ;;  %3779 = vmatprep.subr.bf16.mxu1 %v5492_v25  ;;  %v5571_v24 = vld [vmem:[#allocation5 + $0xba0] ss:$16 sps:$4 sm:$0xff]   ;;  %v5574_v25 = vld [vmem:[#allocation5 + $0xba8] ss:$16 sps:$4 sm:$0xff]  }
 0x19c   :  { %3436 = vmatpush1.bf16.msra.mxu0 %v5487_v26  ;;  %3780 = vmatpush1.bf16.msra.mxu1 %v5490_v27  ;;  %v5579_v26 = vld [vmem:[#allocation5 + $0xbc4] ss:$16 sps:$4 sm:$0xff]   ;;  %v5582_v27 = vld [vmem:[#allocation5 + $0xbcc] ss:$16 sps:$4 sm:$0xff]  }
 0x19d   :  { %3448 = vmatprep.subr.bf16.mxu0 %v5495_v28  ;;  %3792 = vmatprep.subr.bf16.mxu1 %v5498_v29  ;;  %v5577_v28 = vld [vmem:[#allocation5 + $0xbc0] ss:$16 sps:$4 sm:$0xff]   ;;  %v5580_v29 = vld [vmem:[#allocation5 + $0xbc8] ss:$16 sps:$4 sm:$0xff]  }
 0x19f   :  { %3438 = vmatmul.mubr.bf16.vlgmr.msra.gmra.mrb[0].mxu0 %v131_v34  ;;  %3782 = vmatmul.mubr.bf16.vlgmr.msra.gmra.mrb[0].mxu1 %v131_v34  ;;  %v101_v34 = vld [vmem:[#allocation3 + $0x50] sm:$0xff] }
 0x1a0   :  { %3449 = vmatpush1.bf16.msra.mxu0 %v5493_v35  ;;  %3793 = vmatpush1.bf16.msra.mxu1 %v5496_v36  ;;  %v117_v35 = vld [vmem:[#allocation3 + $0xd0] sm:$0xff] }
 0x1a1   :  { %3450 = vmatprep.subr.bf16.mxu0 %v5501_v37  ;;  %3794 = vmatprep.subr.bf16.mxu1 %v5504_v38  ;;  %v5591_v36 = vld [vmem:[#allocation5 + $0xc04] ss:$16 sps:$4 sm:$0xff]   ;;  %v5594_v37 = vld [vmem:[#allocation5 + $0xc0c] ss:$16 sps:$4 sm:$0xff]   ;;  %v133_v38 = vpack.c.bf16 %v117_v35, %v101_v34  ;;  %v5673_v34 = vld [vmem:[#allocation5 + $0xdc0] ss:$16 sps:$4 sm:$0xff]  }
 0x1a2   :  { %3480 = vmatprep.mubr.bf16.mxu0 %v134_v39  ;;  %3824 = vmatprep.mubr.bf16.mxu1 %v134_v39  ;;  %v104_v39 = vld [vmem:[#allocation3 + $0x68] sm:$0xff] }
 0x1a3   :  { %v5676_v35 = vld [vmem:[#allocation5 + $0xdc8] ss:$16 sps:$4 sm:$0xff]  }
 0x1a4   :  { %3451 = vmatpush1.bf16.msra.mxu0 %v5499_v40  ;;  %3795 = vmatpush1.bf16.msra.mxu1 %v5502_v41  ;;  %v120_v40 = vld [vmem:[#allocation3 + $0xe8] sm:$0xff]  ;;  %v5589_v41 = vld [vmem:[#allocation5 + $0xc00] ss:$16 sps:$4 sm:$0xff]  }
 0x1a5   :  { %3452 = vmatprep.subr.bf16.mxu0 %v5507_v42  ;;  %3796 = vmatprep.subr.bf16.mxu1 %v5510_v43  ;;  %v5592_v42 = vld [vmem:[#allocation5 + $0xc08] ss:$16 sps:$4 sm:$0xff]   ;;  %v5597_v43 = vld [vmem:[#allocation5 + $0xc24] ss:$16 sps:$4 sm:$0xff]  }
 0x1a8   :  { %3453 = vmatpush1.bf16.msra.mxu0 %v5505_v44  ;;  %3797 = vmatpush1.bf16.msra.mxu1 %v5508_v45  ;;  %v5600_v44 = vld [vmem:[#allocation5 + $0xc2c] ss:$16 sps:$4 sm:$0xff]   ;;  %v136_v45 = vpack.c.bf16 %v120_v40, %v104_v39  ;;  %v5682_v39 = vld [vmem:[#allocation5 + $0xde8] ss:$16 sps:$4 sm:$0xff]   ;;  %v103_v40 = vld [vmem:[#allocation3 + $0x60] sm:$0xff] }
 0x1a9   :  { %3454 = vmatprep.subr.bf16.mxu0 %v5513_v46  ;;  %3798 = vmatprep.subr.bf16.mxu1 %v5516_v47  ;;  %v5595_v46 = vld [vmem:[#allocation5 + $0xc20] ss:$16 sps:$4 sm:$0xff]   ;;  %v5598_v47 = vld [vmem:[#allocation5 + $0xc28] ss:$16 sps:$4 sm:$0xff]  }
 0x1ac   :  { %3455 = vmatpush1.bf16.msra.mxu0 %v5511_v48  ;;  %3799 = vmatpush1.bf16.msra.mxu1 %v5514_v49  ;;  %v5603_v48 = vld [vmem:[#allocation5 + $0xc44] ss:$16 sps:$4 sm:$0xff]   ;;  %v5606_v49 = vld [vmem:[#allocation5 + $0xc4c] ss:$16 sps:$4 sm:$0xff]  }
 0x1ad   :  { %3456 = vmatprep.subr.bf16.mxu0 %v5519_v50  ;;  %3800 = vmatprep.subr.bf16.mxu1 %v5522_v51  ;;  %v5601_v50 = vld [vmem:[#allocation5 + $0xc40] ss:$16 sps:$4 sm:$0xff]   ;;  %v5604_v51 = vld [vmem:[#allocation5 + $0xc48] ss:$16 sps:$4 sm:$0xff]  }
 0x1b0   :  { %3457 = vmatpush1.bf16.msra.mxu0 %v5517_v52  ;;  %3801 = vmatpush1.bf16.msra.mxu1 %v5520_v53  ;;  %v5609_v52 = vld [vmem:[#allocation5 + $0xc64] ss:$16 sps:$4 sm:$0xff]   ;;  %v5612_v53 = vld [vmem:[#allocation5 + $0xc6c] ss:$16 sps:$4 sm:$0xff]  }
 0x1b1   :  { %3458 = vmatprep.subr.bf16.mxu0 %v5525_v54  ;;  %3802 = vmatprep.subr.bf16.mxu1 %v5528_v55  ;;  %v5607_v54 = vld [vmem:[#allocation5 + $0xc60] ss:$16 sps:$4 sm:$0xff]   ;;  %v5610_v55 = vld [vmem:[#allocation5 + $0xc68] ss:$16 sps:$4 sm:$0xff]  }
 0x1b4   :  { %3459 = vmatpush1.bf16.msra.mxu0 %v5523_v56  ;;  %3803 = vmatpush1.bf16.msra.mxu1 %v5526_v57  ;;  %v5615_v56 = vld [vmem:[#allocation5 + $0xc84] ss:$16 sps:$4 sm:$0xff]   ;;  %v5618_v57 = vld [vmem:[#allocation5 + $0xc8c] ss:$16 sps:$4 sm:$0xff]  }
 0x1b5   :  { %3460 = vmatprep.subr.bf16.mxu0 %v5531_v58  ;;  %3804 = vmatprep.subr.bf16.mxu1 %v5534_v59  ;;  %v5613_v58 = vld [vmem:[#allocation5 + $0xc80] ss:$16 sps:$4 sm:$0xff]   ;;  %v5616_v59 = vld [vmem:[#allocation5 + $0xc88] ss:$16 sps:$4 sm:$0xff]  }
 0x1b8   :  { %3461 = vmatpush1.bf16.msra.mxu0 %v5529_v60  ;;  %3805 = vmatpush1.bf16.msra.mxu1 %v5532_v61  ;;  %v5621_v60 = vld [vmem:[#allocation5 + $0xca4] ss:$16 sps:$4 sm:$0xff]   ;;  %v5624_v61 = vld [vmem:[#allocation5 + $0xcac] ss:$16 sps:$4 sm:$0xff]  }
 0x1b9   :  { %3462 = vmatprep.subr.bf16.mxu0 %v5537_v62  ;;  %3806 = vmatprep.subr.bf16.mxu1 %v5540_v63  ;;  %v5619_v62 = vld [vmem:[#allocation5 + $0xca0] ss:$16 sps:$4 sm:$0xff]   ;;  %v5622_v63 = vld [vmem:[#allocation5 + $0xca8] ss:$16 sps:$4 sm:$0xff]  }
 0x1bc   :  { %3463 = vmatpush1.bf16.msra.mxu0 %v5535_v0  ;;  %3807 = vmatpush1.bf16.msra.mxu1 %v5538_v1  ;;  %v5627_v0 = vld [vmem:[#allocation5 + $0xcc4] ss:$16 sps:$4 sm:$0xff]   ;;  %v5630_v1 = vld [vmem:[#allocation5 + $0xccc] ss:$16 sps:$4 sm:$0xff]  }
 0x1bd   :  { %3464 = vmatprep.subr.bf16.mxu0 %v5543_v2  ;;  %3808 = vmatprep.subr.bf16.mxu1 %v5546_v3  ;;  %v5625_v2 = vld [vmem:[#allocation5 + $0xcc0] ss:$16 sps:$4 sm:$0xff]   ;;  %v5628_v3 = vld [vmem:[#allocation5 + $0xcc8] ss:$16 sps:$4 sm:$0xff]  }
 0x1c0   :  { %3465 = vmatpush1.bf16.msra.mxu0 %v5541_v4  ;;  %3809 = vmatpush1.bf16.msra.mxu1 %v5544_v5  ;;  %v5633_v4 = vld [vmem:[#allocation5 + $0xce4] ss:$16 sps:$4 sm:$0xff]   ;;  %v5636_v5 = vld [vmem:[#allocation5 + $0xcec] ss:$16 sps:$4 sm:$0xff]  }
 0x1c1   :  { %3466 = vmatprep.subr.bf16.mxu0 %v5549_v6  ;;  %3810 = vmatprep.subr.bf16.mxu1 %v5552_v7  ;;  %v5631_v6 = vld [vmem:[#allocation5 + $0xce0] ss:$16 sps:$4 sm:$0xff]   ;;  %v5634_v7 = vld [vmem:[#allocation5 + $0xce8] ss:$16 sps:$4 sm:$0xff]  }
 0x1c4   :  { %3467 = vmatpush1.bf16.msra.mxu0 %v5547_v8  ;;  %3811 = vmatpush1.bf16.msra.mxu1 %v5550_v9  ;;  %v5639_v8 = vld [vmem:[#allocation5 + $0xd04] ss:$16 sps:$4 sm:$0xff]   ;;  %v5642_v9 = vld [vmem:[#allocation5 + $0xd0c] ss:$16 sps:$4 sm:$0xff]  }
 0x1c5   :  { %3468 = vmatprep.subr.bf16.mxu0 %v5555_v10  ;;  %3812 = vmatprep.subr.bf16.mxu1 %v5558_v11  ;;  %v5637_v10 = vld [vmem:[#allocation5 + $0xd00] ss:$16 sps:$4 sm:$0xff]   ;;  %v5640_v11 = vld [vmem:[#allocation5 + $0xd08] ss:$16 sps:$4 sm:$0xff]  }
 0x1c8   :  { %3469 = vmatpush1.bf16.msra.mxu0 %v5553_v12  ;;  %3813 = vmatpush1.bf16.msra.mxu1 %v5556_v13  ;;  %v5645_v12 = vld [vmem:[#allocation5 + $0xd24] ss:$16 sps:$4 sm:$0xff]   ;;  %v5648_v13 = vld [vmem:[#allocation5 + $0xd2c] ss:$16 sps:$4 sm:$0xff]  }
 0x1c9   :  { %3470 = vmatprep.subr.bf16.mxu0 %v5561_v14  ;;  %3814 = vmatprep.subr.bf16.mxu1 %v5564_v15  ;;  %v5643_v14 = vld [vmem:[#allocation5 + $0xd20] ss:$16 sps:$4 sm:$0xff]   ;;  %v5646_v15 = vld [vmem:[#allocation5 + $0xd28] ss:$16 sps:$4 sm:$0xff]  }
 0x1cc   :  { %3471 = vmatpush1.bf16.msra.mxu0 %v5559_v16  ;;  %3815 = vmatpush1.bf16.msra.mxu1 %v5562_v17  ;;  %v5651_v16 = vld [vmem:[#allocation5 + $0xd44] ss:$16 sps:$4 sm:$0xff]   ;;  %v5654_v17 = vld [vmem:[#allocation5 + $0xd4c] ss:$16 sps:$4 sm:$0xff]  }
 0x1cd   :  { %3472 = vmatprep.subr.bf16.mxu0 %v5567_v18  ;;  %3816 = vmatprep.subr.bf16.mxu1 %v5570_v19  ;;  %v5649_v18 = vld [vmem:[#allocation5 + $0xd40] ss:$16 sps:$4 sm:$0xff]   ;;  %v5652_v19 = vld [vmem:[#allocation5 + $0xd48] ss:$16 sps:$4 sm:$0xff]  }
 0x1d0   :  { %3473 = vmatpush1.bf16.msra.mxu0 %v5565_v20  ;;  %3817 = vmatpush1.bf16.msra.mxu1 %v5568_v21  ;;  %v5657_v20 = vld [vmem:[#allocation5 + $0xd64] ss:$16 sps:$4 sm:$0xff]   ;;  %v5660_v21 = vld [vmem:[#allocation5 + $0xd6c] ss:$16 sps:$4 sm:$0xff]  }
 0x1d1   :  { %3474 = vmatprep.subr.bf16.mxu0 %v5573_v22  ;;  %3818 = vmatprep.subr.bf16.mxu1 %v5576_v23  ;;  %v5655_v22 = vld [vmem:[#allocation5 + $0xd60] ss:$16 sps:$4 sm:$0xff]   ;;  %v5658_v23 = vld [vmem:[#allocation5 + $0xd68] ss:$16 sps:$4 sm:$0xff]  }
 0x1d4   :  { %3475 = vmatpush1.bf16.msra.mxu0 %v5571_v24  ;;  %3819 = vmatpush1.bf16.msra.mxu1 %v5574_v25  ;;  %v5663_v24 = vld [vmem:[#allocation5 + $0xd84] ss:$16 sps:$4 sm:$0xff]   ;;  %v5666_v25 = vld [vmem:[#allocation5 + $0xd8c] ss:$16 sps:$4 sm:$0xff]  }
 0x1d5   :  { %3476 = vmatprep.subr.bf16.mxu0 %v5579_v26  ;;  %3820 = vmatprep.subr.bf16.mxu1 %v5582_v27  ;;  %v5661_v26 = vld [vmem:[#allocation5 + $0xd80] ss:$16 sps:$4 sm:$0xff]   ;;  %v5664_v27 = vld [vmem:[#allocation5 + $0xd88] ss:$16 sps:$4 sm:$0xff]  }
 0x1d8   :  { %3477 = vmatpush1.bf16.msra.mxu0 %v5577_v28  ;;  %3821 = vmatpush1.bf16.msra.mxu1 %v5580_v29  ;;  %v5669_v28 = vld [vmem:[#allocation5 + $0xda4] ss:$16 sps:$4 sm:$0xff]   ;;  %v5672_v29 = vld [vmem:[#allocation5 + $0xdac] ss:$16 sps:$4 sm:$0xff]  }
 0x1d9   :  { %3478 = vmatprep.subr.bf16.mxu0 %v5585_v30  ;;  %3822 = vmatprep.subr.bf16.mxu1 %v5588_v31  ;;  %v5667_v30 = vld [vmem:[#allocation5 + $0xda0] ss:$16 sps:$4 sm:$0xff]   ;;  %v5670_v31 = vld [vmem:[#allocation5 + $0xda8] ss:$16 sps:$4 sm:$0xff]  }
 0x1dc   :  { %3479 = vmatpush1.bf16.msra.mxu0 %v5583_v32  ;;  %3823 = vmatpush1.bf16.msra.mxu1 %v5586_v33  ;;  %v5675_v32 = vld [vmem:[#allocation5 + $0xdc4] ss:$16 sps:$4 sm:$0xff]   ;;  %v5678_v33 = vld [vmem:[#allocation5 + $0xdcc] ss:$16 sps:$4 sm:$0xff]  }
 0x1dd   :  { %3491 = vmatprep.subr.bf16.mxu0 %v5591_v36  ;;  %3835 = vmatprep.subr.bf16.mxu1 %v5594_v37  ;;  %v5681_v36 = vld [vmem:[#allocation5 + $0xde4] ss:$16 sps:$4 sm:$0xff]   ;;  %v5684_v37 = vld [vmem:[#allocation5 + $0xdec] ss:$16 sps:$4 sm:$0xff]  }
 0x1df   :  { %3481 = vmatmul.mubr.bf16.vlgmr.msra.gmra.mrb[0].mxu0 %v133_v38  ;;  %3825 = vmatmul.mubr.bf16.vlgmr.msra.gmra.mrb[0].mxu1 %v133_v38  ;;  %v5679_v38 = vld [vmem:[#allocation5 + $0xde0] ss:$16 sps:$4 sm:$0xff]  }
 0x1e0   :  { %3492 = vmatpush1.bf16.msra.mxu0 %v5589_v41  ;;  %3836 = vmatpush1.bf16.msra.mxu1 %v5592_v42  ;;  %v119_v41 = vld [vmem:[#allocation3 + $0xe0] sm:$0xff] }
 0x1e1   :  { %3493 = vmatprep.subr.bf16.mxu0 %v5597_v43  ;;  %3837 = vmatprep.subr.bf16.mxu1 %v5600_v44  ;;  %v5687_v42 = vld [vmem:[#allocation5 + $0xe04] ss:$16 sps:$4 sm:$0xff]   ;;  %v5690_v43 = vld [vmem:[#allocation5 + $0xe0c] ss:$16 sps:$4 sm:$0xff]   ;;  %v135_v44 = vpack.c.bf16 %v119_v41, %v103_v40  ;;  %v5769_v40 = vld [vmem:[#allocation5 + $0xfc0] ss:$16 sps:$4 sm:$0xff]  }
 0x1e2   :  { %3523 = vmatprep.mubr.bf16.mxu0 %v136_v45  ;;  %3867 = vmatprep.mubr.bf16.mxu1 %v136_v45  ;;  %v106_v45 = vld [vmem:[#allocation3 + $0x78] sm:$0xff] }
 0x1e3   :  { %v5772_v41 = vld [vmem:[#allocation5 + $0xfc8] ss:$16 sps:$4 sm:$0xff]  }
 0x1e4   :  { %3494 = vmatpush1.bf16.msra.mxu0 %v5595_v46  ;;  %3838 = vmatpush1.bf16.msra.mxu1 %v5598_v47  ;;  %v122_v46 = vld [vmem:[#allocation3 + $0xf8] sm:$0xff]  ;;  %v5685_v47 = vld [vmem:[#allocation5 + $0xe00] ss:$16 sps:$4 sm:$0xff]  }
 0x1e5   :  { %3495 = vmatprep.subr.bf16.mxu0 %v5603_v48  ;;  %3839 = vmatprep.subr.bf16.mxu1 %v5606_v49  ;;  %v5688_v48 = vld [vmem:[#allocation5 + $0xe08] ss:$16 sps:$4 sm:$0xff]   ;;  %v5693_v49 = vld [vmem:[#allocation5 + $0xe24] ss:$16 sps:$4 sm:$0xff]  }
 0x1e8   :  { %3496 = vmatpush1.bf16.msra.mxu0 %v5601_v50  ;;  %3840 = vmatpush1.bf16.msra.mxu1 %v5604_v51  ;;  %v5696_v50 = vld [vmem:[#allocation5 + $0xe2c] ss:$16 sps:$4 sm:$0xff]   ;;  %v138_v51 = vpack.c.bf16 %v122_v46, %v106_v45  ;;  %v5778_v45 = vld [vmem:[#allocation5 + $0xfe8] ss:$16 sps:$4 sm:$0xff]   ;;  %v105_v46 = vld [vmem:[#allocation3 + $0x70] sm:$0xff] }
 0x1e9   :  { %3497 = vmatprep.subr.bf16.mxu0 %v5609_v52  ;;  %3841 = vmatprep.subr.bf16.mxu1 %v5612_v53  ;;  %v5691_v52 = vld [vmem:[#allocation5 + $0xe20] ss:$16 sps:$4 sm:$0xff]   ;;  %v5694_v53 = vld [vmem:[#allocation5 + $0xe28] ss:$16 sps:$4 sm:$0xff]  }
 0x1ec   :  { %3498 = vmatpush1.bf16.msra.mxu0 %v5607_v54  ;;  %3842 = vmatpush1.bf16.msra.mxu1 %v5610_v55  ;;  %v5699_v54 = vld [vmem:[#allocation5 + $0xe44] ss:$16 sps:$4 sm:$0xff]   ;;  %v5702_v55 = vld [vmem:[#allocation5 + $0xe4c] ss:$16 sps:$4 sm:$0xff]  }
 0x1ed   :  { %3499 = vmatprep.subr.bf16.mxu0 %v5615_v56  ;;  %3843 = vmatprep.subr.bf16.mxu1 %v5618_v57  ;;  %v5697_v56 = vld [vmem:[#allocation5 + $0xe40] ss:$16 sps:$4 sm:$0xff]   ;;  %v5700_v57 = vld [vmem:[#allocation5 + $0xe48] ss:$16 sps:$4 sm:$0xff]  }
 0x1f0   :  { %3500 = vmatpush1.bf16.msra.mxu0 %v5613_v58  ;;  %3844 = vmatpush1.bf16.msra.mxu1 %v5616_v59  ;;  %v5705_v58 = vld [vmem:[#allocation5 + $0xe64] ss:$16 sps:$4 sm:$0xff]   ;;  %v5708_v59 = vld [vmem:[#allocation5 + $0xe6c] ss:$16 sps:$4 sm:$0xff]  }
 0x1f1   :  { %3501 = vmatprep.subr.bf16.mxu0 %v5621_v60  ;;  %3845 = vmatprep.subr.bf16.mxu1 %v5624_v61  ;;  %v5703_v60 = vld [vmem:[#allocation5 + $0xe60] ss:$16 sps:$4 sm:$0xff]   ;;  %v5706_v61 = vld [vmem:[#allocation5 + $0xe68] ss:$16 sps:$4 sm:$0xff]  }
 0x1f4   :  { %3502 = vmatpush1.bf16.msra.mxu0 %v5619_v62  ;;  %3846 = vmatpush1.bf16.msra.mxu1 %v5622_v63  ;;  %v5711_v62 = vld [vmem:[#allocation5 + $0xe84] ss:$16 sps:$4 sm:$0xff]   ;;  %v5714_v63 = vld [vmem:[#allocation5 + $0xe8c] ss:$16 sps:$4 sm:$0xff]  }
 0x1f5   :  { %3503 = vmatprep.subr.bf16.mxu0 %v5627_v0  ;;  %3847 = vmatprep.subr.bf16.mxu1 %v5630_v1  ;;  %v5709_v0 = vld [vmem:[#allocation5 + $0xe80] ss:$16 sps:$4 sm:$0xff]   ;;  %v5712_v1 = vld [vmem:[#allocation5 + $0xe88] ss:$16 sps:$4 sm:$0xff]  }
 0x1f8   :  { %3504 = vmatpush1.bf16.msra.mxu0 %v5625_v2  ;;  %3848 = vmatpush1.bf16.msra.mxu1 %v5628_v3  ;;  %v5717_v2 = vld [vmem:[#allocation5 + $0xea4] ss:$16 sps:$4 sm:$0xff]   ;;  %v5720_v3 = vld [vmem:[#allocation5 + $0xeac] ss:$16 sps:$4 sm:$0xff]  }
 0x1f9   :  { %3505 = vmatprep.subr.bf16.mxu0 %v5633_v4  ;;  %3849 = vmatprep.subr.bf16.mxu1 %v5636_v5  ;;  %v5715_v4 = vld [vmem:[#allocation5 + $0xea0] ss:$16 sps:$4 sm:$0xff]   ;;  %v5718_v5 = vld [vmem:[#allocation5 + $0xea8] ss:$16 sps:$4 sm:$0xff]  }
 0x1fc   :  { %3506 = vmatpush1.bf16.msra.mxu0 %v5631_v6  ;;  %3850 = vmatpush1.bf16.msra.mxu1 %v5634_v7  ;;  %v5723_v6 = vld [vmem:[#allocation5 + $0xec4] ss:$16 sps:$4 sm:$0xff]   ;;  %v5726_v7 = vld [vmem:[#allocation5 + $0xecc] ss:$16 sps:$4 sm:$0xff]  }
 0x1fd   :  { %3507 = vmatprep.subr.bf16.mxu0 %v5639_v8  ;;  %3851 = vmatprep.subr.bf16.mxu1 %v5642_v9  ;;  %v5721_v8 = vld [vmem:[#allocation5 + $0xec0] ss:$16 sps:$4 sm:$0xff]   ;;  %v5724_v9 = vld [vmem:[#allocation5 + $0xec8] ss:$16 sps:$4 sm:$0xff]  }
 0x200   :  { %3508 = vmatpush1.bf16.msra.mxu0 %v5637_v10  ;;  %3852 = vmatpush1.bf16.msra.mxu1 %v5640_v11  ;;  %v5729_v10 = vld [vmem:[#allocation5 + $0xee4] ss:$16 sps:$4 sm:$0xff]   ;;  %v5732_v11 = vld [vmem:[#allocation5 + $0xeec] ss:$16 sps:$4 sm:$0xff]  }
 0x201   :  { %3509 = vmatprep.subr.bf16.mxu0 %v5645_v12  ;;  %3853 = vmatprep.subr.bf16.mxu1 %v5648_v13  ;;  %v5727_v12 = vld [vmem:[#allocation5 + $0xee0] ss:$16 sps:$4 sm:$0xff]   ;;  %v5730_v13 = vld [vmem:[#allocation5 + $0xee8] ss:$16 sps:$4 sm:$0xff]  }
 0x204   :  { %3510 = vmatpush1.bf16.msra.mxu0 %v5643_v14  ;;  %3854 = vmatpush1.bf16.msra.mxu1 %v5646_v15  ;;  %v5735_v14 = vld [vmem:[#allocation5 + $0xf04] ss:$16 sps:$4 sm:$0xff]   ;;  %v5738_v15 = vld [vmem:[#allocation5 + $0xf0c] ss:$16 sps:$4 sm:$0xff]  }
 0x205   :  { %3511 = vmatprep.subr.bf16.mxu0 %v5651_v16  ;;  %3855 = vmatprep.subr.bf16.mxu1 %v5654_v17  ;;  %v5733_v16 = vld [vmem:[#allocation5 + $0xf00] ss:$16 sps:$4 sm:$0xff]   ;;  %v5736_v17 = vld [vmem:[#allocation5 + $0xf08] ss:$16 sps:$4 sm:$0xff]  }
 0x208   :  { %3512 = vmatpush1.bf16.msra.mxu0 %v5649_v18  ;;  %3856 = vmatpush1.bf16.msra.mxu1 %v5652_v19  ;;  %v5741_v18 = vld [vmem:[#allocation5 + $0xf24] ss:$16 sps:$4 sm:$0xff]   ;;  %v5744_v19 = vld [vmem:[#allocation5 + $0xf2c] ss:$16 sps:$4 sm:$0xff]  }
 0x209   :  { %3513 = vmatprep.subr.bf16.mxu0 %v5657_v20  ;;  %3857 = vmatprep.subr.bf16.mxu1 %v5660_v21  ;;  %v5739_v20 = vld [vmem:[#allocation5 + $0xf20] ss:$16 sps:$4 sm:$0xff]   ;;  %v5742_v21 = vld [vmem:[#allocation5 + $0xf28] ss:$16 sps:$4 sm:$0xff]  }
 0x20c   :  { %3514 = vmatpush1.bf16.msra.mxu0 %v5655_v22  ;;  %3858 = vmatpush1.bf16.msra.mxu1 %v5658_v23  ;;  %v5747_v22 = vld [vmem:[#allocation5 + $0xf44] ss:$16 sps:$4 sm:$0xff]   ;;  %v5750_v23 = vld [vmem:[#allocation5 + $0xf4c] ss:$16 sps:$4 sm:$0xff]  }
 0x20d   :  { %3515 = vmatprep.subr.bf16.mxu0 %v5663_v24  ;;  %3859 = vmatprep.subr.bf16.mxu1 %v5666_v25  ;;  %v5745_v24 = vld [vmem:[#allocation5 + $0xf40] ss:$16 sps:$4 sm:$0xff]   ;;  %v5748_v25 = vld [vmem:[#allocation5 + $0xf48] ss:$16 sps:$4 sm:$0xff]  }
 0x210   :  { %3516 = vmatpush1.bf16.msra.mxu0 %v5661_v26  ;;  %3860 = vmatpush1.bf16.msra.mxu1 %v5664_v27  ;;  %v5753_v26 = vld [vmem:[#allocation5 + $0xf64] ss:$16 sps:$4 sm:$0xff]   ;;  %v5756_v27 = vld [vmem:[#allocation5 + $0xf6c] ss:$16 sps:$4 sm:$0xff]  }
 0x211   :  { %3517 = vmatprep.subr.bf16.mxu0 %v5669_v28  ;;  %3861 = vmatprep.subr.bf16.mxu1 %v5672_v29  ;;  %v5751_v28 = vld [vmem:[#allocation5 + $0xf60] ss:$16 sps:$4 sm:$0xff]   ;;  %v5754_v29 = vld [vmem:[#allocation5 + $0xf68] ss:$16 sps:$4 sm:$0xff]  }
 0x214   :  { %3518 = vmatpush1.bf16.msra.mxu0 %v5667_v30  ;;  %3862 = vmatpush1.bf16.msra.mxu1 %v5670_v31  ;;  %v5759_v30 = vld [vmem:[#allocation5 + $0xf84] ss:$16 sps:$4 sm:$0xff]   ;;  %v5762_v31 = vld [vmem:[#allocation5 + $0xf8c] ss:$16 sps:$4 sm:$0xff]  }
 0x215   :  { %3519 = vmatprep.subr.bf16.mxu0 %v5675_v32  ;;  %3863 = vmatprep.subr.bf16.mxu1 %v5678_v33  ;;  %v5757_v32 = vld [vmem:[#allocation5 + $0xf80] ss:$16 sps:$4 sm:$0xff]   ;;  %v5760_v33 = vld [vmem:[#allocation5 + $0xf88] ss:$16 sps:$4 sm:$0xff]  }
 0x218   :  { %3520 = vmatpush1.bf16.msra.mxu0 %v5673_v34  ;;  %3864 = vmatpush1.bf16.msra.mxu1 %v5676_v35  ;;  %v5765_v34 = vld [vmem:[#allocation5 + $0xfa4] ss:$16 sps:$4 sm:$0xff]   ;;  %v5768_v35 = vld [vmem:[#allocation5 + $0xfac] ss:$16 sps:$4 sm:$0xff]  }
 0x219   :  { %3521 = vmatprep.subr.bf16.mxu0 %v5681_v36  ;;  %3865 = vmatprep.subr.bf16.mxu1 %v5684_v37  ;;  %v5763_v36 = vld [vmem:[#allocation5 + $0xfa0] ss:$16 sps:$4 sm:$0xff]   ;;  %v5766_v37 = vld [vmem:[#allocation5 + $0xfa8] ss:$16 sps:$4 sm:$0xff]  }
 0x21c   :  { %3522 = vmatpush1.bf16.msra.mxu0 %v5679_v38  ;;  %3866 = vmatpush1.bf16.msra.mxu1 %v5682_v39  ;;  %v5771_v38 = vld [vmem:[#allocation5 + $0xfc4] ss:$16 sps:$4 sm:$0xff]   ;;  %v5774_v39 = vld [vmem:[#allocation5 + $0xfcc] ss:$16 sps:$4 sm:$0xff]  }
 0x21d   :  { %3534 = vmatprep.subr.bf16.mxu0 %v5687_v42  ;;  %3878 = vmatprep.subr.bf16.mxu1 %v5690_v43  ;;  %v5777_v42 = vld [vmem:[#allocation5 + $0xfe4] ss:$16 sps:$4 sm:$0xff]   ;;  %v5780_v43 = vld [vmem:[#allocation5 + $0xfec] ss:$16 sps:$4 sm:$0xff]  }
 0x21f   :  { %3524 = vmatmul.mubr.bf16.vlgmr.msra.gmra.mrb[0].mxu0 %v135_v44  ;;  %3868 = vmatmul.mubr.bf16.vlgmr.msra.gmra.mrb[0].mxu1 %v135_v44  ;;  %v5775_v44 = vld [vmem:[#allocation5 + $0xfe0] ss:$16 sps:$4 sm:$0xff]  }
 0x220   :  { %3535 = vmatpush1.bf16.msra.mxu0 %v5685_v47  ;;  %3879 = vmatpush1.bf16.msra.mxu1 %v5688_v48  ;;  %v121_v47 = vld [vmem:[#allocation3 + $0xf0] sm:$0xff]  ;;  %v5781_v48 = vld [vmem:[%s6156_s3 + $0x40] sm:$0xff]  }
 0x221   :  { %3536 = vmatprep.subr.bf16.mxu0 %v5693_v49  ;;  %3880 = vmatprep.subr.bf16.mxu1 %v5696_v50  ;;  %v5782_v49 = vld [vmem:[%s6156_s3 + $0xc0] sm:$0xff]   ;;  %v137_v50 = vpack.c.bf16 %v121_v47, %v105_v46 }
 0x222   :  { %3566 = vmatprep.mubr.bf16.mxu0 %v138_v51  ;;  %3910 = vmatprep.mubr.bf16.mxu1 %v138_v51  ;;  %v5783_v51 = vld [vmem:[%s6156_s3] sm:$0xff]  }
 0x224   :  { %3537 = vmatpush1.bf16.msra.mxu0 %v5691_v52  ;;  %3881 = vmatpush1.bf16.msra.mxu1 %v5694_v53  ;;  %v5784_v52 = vld [vmem:[%s6156_s3 + $0x80] sm:$0xff]   ;;  %v5785_v53 = vld [vmem:[%s6156_s3 + $0x48] sm:$0xff]  }
 0x225   :  { %3538 = vmatprep.subr.bf16.mxu0 %v5699_v54  ;;  %3882 = vmatprep.subr.bf16.mxu1 %v5702_v55  ;;  %v5786_v54 = vld [vmem:[%s6156_s3 + $0xc8] sm:$0xff]  }
 0x226   :  { %v5787_v55 = vld [vmem:[%s6156_s3 + $0x8] sm:$0xff]  }
 0x228   :  { %3539 = vmatpush1.bf16.msra.mxu0 %v5697_v56  ;;  %3883 = vmatpush1.bf16.msra.mxu1 %v5700_v57  ;;  %v5788_v56 = vld [vmem:[%s6156_s3 + $0x88] sm:$0xff]   ;;  %v5789_v57 = vld [vmem:[%s6156_s3 + $0x50] sm:$0xff]  }
 0x229   :  { %3540 = vmatprep.subr.bf16.mxu0 %v5705_v58  ;;  %3884 = vmatprep.subr.bf16.mxu1 %v5708_v59  ;;  %v5790_v58 = vld [vmem:[%s6156_s3 + $0xd0] sm:$0xff]  }
 0x22a   :  { %v5791_v59 = vld [vmem:[%s6156_s3 + $0x10] sm:$0xff]  }
 0x22c   :  { %3541 = vmatpush1.bf16.msra.mxu0 %v5703_v60  ;;  %3885 = vmatpush1.bf16.msra.mxu1 %v5706_v61  ;;  %v5792_v60 = vld [vmem:[%s6156_s3 + $0x90] sm:$0xff]   ;;  %v5793_v61 = vld [vmem:[%s6156_s3 + $0x58] sm:$0xff]  }
 0x22d   :  { %3542 = vmatprep.subr.bf16.mxu0 %v5711_v62  ;;  %3886 = vmatprep.subr.bf16.mxu1 %v5714_v63  ;;  %v5794_v62 = vld [vmem:[%s6156_s3 + $0xd8] sm:$0xff]  }
 0x22e   :  { %v5795_v63 = vld [vmem:[%s6156_s3 + $0x18] sm:$0xff]  }
 0x230   :  { %3543 = vmatpush1.bf16.msra.mxu0 %v5709_v0  ;;  %3887 = vmatpush1.bf16.msra.mxu1 %v5712_v1  ;;  %v5796_v0 = vld [vmem:[%s6156_s3 + $0x98] sm:$0xff]   ;;  %v5797_v1 = vld [vmem:[%s6156_s3 + $0x60] sm:$0xff]  }
 0x231   :  { %3544 = vmatprep.subr.bf16.mxu0 %v5717_v2  ;;  %3888 = vmatprep.subr.bf16.mxu1 %v5720_v3  ;;  %v5798_v2 = vld [vmem:[%s6156_s3 + $0xe0] sm:$0xff]  }
 0x232   :  { %v5799_v3 = vld [vmem:[%s6156_s3 + $0x20] sm:$0xff]  }
 0x234   :  { %3545 = vmatpush1.bf16.msra.mxu0 %v5715_v4  ;;  %3889 = vmatpush1.bf16.msra.mxu1 %v5718_v5  ;;  %v5800_v4 = vld [vmem:[%s6156_s3 + $0xa0] sm:$0xff]   ;;  %v5801_v5 = vld [vmem:[%s6156_s3 + $0x68] sm:$0xff]  }
 0x235   :  { %3546 = vmatprep.subr.bf16.mxu0 %v5723_v6  ;;  %3890 = vmatprep.subr.bf16.mxu1 %v5726_v7  ;;  %v5802_v6 = vld [vmem:[%s6156_s3 + $0xe8] sm:$0xff]  }
 0x236   :  { %v5803_v7 = vld [vmem:[%s6156_s3 + $0x28] sm:$0xff]  }
 0x238   :  { %3547 = vmatpush1.bf16.msra.mxu0 %v5721_v8  ;;  %3891 = vmatpush1.bf16.msra.mxu1 %v5724_v9  ;;  %v5804_v8 = vld [vmem:[%s6156_s3 + $0xa8] sm:$0xff]   ;;  %v5805_v9 = vld [vmem:[%s6156_s3 + $0x70] sm:$0xff]  }
 0x239   :  { %3548 = vmatprep.subr.bf16.mxu0 %v5729_v10  ;;  %3892 = vmatprep.subr.bf16.mxu1 %v5732_v11  ;;  %v5806_v10 = vld [vmem:[%s6156_s3 + $0xf0] sm:$0xff]  }
 0x23a   :  { %v5807_v11 = vld [vmem:[%s6156_s3 + $0x30] sm:$0xff]  }
 0x23c   :  { %3549 = vmatpush1.bf16.msra.mxu0 %v5727_v12  ;;  %3893 = vmatpush1.bf16.msra.mxu1 %v5730_v13  ;;  %v5808_v12 = vld [vmem:[%s6156_s3 + $0xb0] sm:$0xff]   ;;  %v5809_v13 = vld [vmem:[%s6156_s3 + $0x78] sm:$0xff]  }
 0x23d   :  { %3550 = vmatprep.subr.bf16.mxu0 %v5735_v14  ;;  %3894 = vmatprep.subr.bf16.mxu1 %v5738_v15  ;;  %v5810_v14 = vld [vmem:[%s6156_s3 + $0xf8] sm:$0xff]  }
 0x23e   :  { %v5811_v15 = vld [vmem:[%s6156_s3 + $0x38] sm:$0xff]  }
 0x240   :  { %3551 = vmatpush1.bf16.msra.mxu0 %v5733_v16  ;;  %3895 = vmatpush1.bf16.msra.mxu1 %v5736_v17  ;;  %v5812_v16 = vld [vmem:[%s6156_s3 + $0xb8] sm:$0xff]   ;;  %v653_v17 = vlaneseq }
 0x241   :  { %3552 = vmatprep.subr.bf16.mxu0 %v5741_v18  ;;  %3896 = vmatprep.subr.bf16.mxu1 %v5744_v19 }
 0x242   :  { %v654_v18 = vshrl.u32 %v653_v17, 7 }
 0x244   :  { %3553 = vmatpush1.bf16.msra.mxu0 %v5739_v20  ;;  %3897 = vmatpush1.bf16.msra.mxu1 %v5742_v21  ;;  %v655_v19 = vsub.s32 0, %v654_v18  ;;  %v663_v20 = vsub.s32 2, %v654_v18  ;;  %v651_v21 = vld [vmem:[#allocation7] sm:$0xf] }
 0x245   :  { %3554 = vmatprep.subr.bf16.mxu0 %v5747_v22  ;;  %3898 = vmatprep.subr.bf16.mxu1 %v5750_v23  ;;  %v659_v22 = vsub.s32 1, %v654_v18  ;;  %v667_v23 = vsub.s32 3, %v654_v18  ;;  %v4892_v18 = vld [vmem:[#allocation10] ss:$0 sm:$0xff] }
 0x248   :  { %3555 = vmatpush1.bf16.msra.mxu0 %v5745_v24  ;;  %3899 = vmatpush1.bf16.msra.mxu1 %v5748_v25  ;;  %v656_v24 = vrot.slane %v651_v21, %v655_v19  ;;  %v664_v25 = vrot.slane %v651_v21, %v663_v20 }
 0x249   :  { %3556 = vmatprep.subr.bf16.mxu0 %v5753_v26  ;;  %3900 = vmatprep.subr.bf16.mxu1 %v5756_v27  ;;  %v660_v26 = vrot.slane %v651_v21, %v659_v22  ;;  %v668_v27 = vrot.slane %v651_v21, %v667_v23 }
 0x24c   :  { %3557 = vmatpush1.bf16.msra.mxu0 %v5751_v28  ;;  %3901 = vmatpush1.bf16.msra.mxu1 %v5754_v29 }
 0x24d   :  { %3558 = vmatprep.subr.bf16.mxu0 %v5759_v30  ;;  %3902 = vmatprep.subr.bf16.mxu1 %v5762_v31 }
 0x250   :  { %3559 = vmatpush1.bf16.msra.mxu0 %v5757_v32  ;;  %3903 = vmatpush1.bf16.msra.mxu1 %v5760_v33 }
 0x251   :  { %3560 = vmatprep.subr.bf16.mxu0 %v5765_v34  ;;  %3904 = vmatprep.subr.bf16.mxu1 %v5768_v35 }
 0x254   :  { %3561 = vmatpush1.bf16.msra.mxu0 %v5763_v36  ;;  %3905 = vmatpush1.bf16.msra.mxu1 %v5766_v37 }
 0x255   :  { %3562 = vmatprep.subr.bf16.mxu0 %v5771_v38  ;;  %3906 = vmatprep.subr.bf16.mxu1 %v5774_v39 }
 0x258   :  { %3563 = vmatpush1.bf16.msra.mxu0 %v5769_v40  ;;  %3907 = vmatpush1.bf16.msra.mxu1 %v5772_v41 }
 0x259   :  { %3564 = vmatprep.subr.bf16.mxu0 %v5777_v42  ;;  %3908 = vmatprep.subr.bf16.mxu1 %v5780_v43 }
 0x25c   :  { %3565 = vmatpush1.bf16.msra.mxu0 %v5775_v44  ;;  %3909 = vmatpush1.bf16.msra.mxu1 %v5778_v45 }
 0x25d   :  { %4896 = vmatprep.subr.bf16.mxu0 %v5781_v48  ;;  %4918 = vmatprep.subr.bf16.mxu1 %v5782_v49 }
 0x25f   :  { %3567 = vmatmul.mubr.bf16.vlgmr.msra.gmra.mrb[0].mxu0 %v137_v50  ;;  %3911 = vmatmul.mubr.bf16.vlgmr.msra.gmra.mrb[0].mxu1 %v137_v50 }
 0x260   :  { %4897 = vmatpush3.bf16.msra.mxu0 %v5783_v51  ;;  %4919 = vmatpush3.bf16.msra.mxu1 %v5784_v52 }
 0x261   :  { %4898 = vmatprep.subr.bf16.mxu0 %v5785_v53  ;;  %4920 = vmatprep.subr.bf16.mxu1 %v5786_v54 }
 0x264   :  { %4899 = vmatpush3.bf16.msra.mxu0 %v5787_v55  ;;  %4921 = vmatpush3.bf16.msra.mxu1 %v5788_v56 }
 0x265   :  { %4900 = vmatprep.subr.bf16.mxu0 %v5789_v57  ;;  %4922 = vmatprep.subr.bf16.mxu1 %v5790_v58 }
 0x268   :  { %4901 = vmatpush3.bf16.msra.mxu0 %v5791_v59  ;;  %4923 = vmatpush3.bf16.msra.mxu1 %v5792_v60 }
 0x269   :  { %4902 = vmatprep.subr.bf16.mxu0 %v5793_v61  ;;  %4924 = vmatprep.subr.bf16.mxu1 %v5794_v62 }
 0x26c   :  { %4903 = vmatpush3.bf16.msra.mxu0 %v5795_v63  ;;  %4925 = vmatpush3.bf16.msra.mxu1 %v5796_v0 }
 0x26d   :  { %4904 = vmatprep.subr.bf16.mxu0 %v5797_v1  ;;  %4926 = vmatprep.subr.bf16.mxu1 %v5798_v2  ;;  %v4859_v2 = vld [vmem:[#allocation8] ss:$0 sm:$0xff] }
 0x270   :  { %4905 = vmatpush3.bf16.msra.mxu0 %v5799_v3  ;;  %4927 = vmatpush3.bf16.msra.mxu1 %v5800_v4 }
 0x271   :  { %4906 = vmatprep.subr.bf16.mxu0 %v5801_v5  ;;  %4928 = vmatprep.subr.bf16.mxu1 %v5802_v6 }
 0x274   :  { %4907 = vmatpush3.bf16.msra.mxu0 %v5803_v7  ;;  %4929 = vmatpush3.bf16.msra.mxu1 %v5804_v8 }
 0x275   :  { %4908 = vmatprep.subr.bf16.mxu0 %v5805_v9  ;;  %4930 = vmatprep.subr.bf16.mxu1 %v5806_v10 }
 0x278   :  { %4909 = vmatpush3.bf16.msra.mxu0 %v5807_v11  ;;  %4931 = vmatpush3.bf16.msra.mxu1 %v5808_v12 }
 0x279   :  { %4910 = vmatprep.subr.bf16.mxu0 %v5809_v13  ;;  %4932 = vmatprep.subr.bf16.mxu1 %v5810_v14 }
 0x27c   :  { %4911 = vmatpush3.bf16.msra.mxu0 %v5811_v15  ;;  %4933 = vmatpush3.bf16.msra.mxu1 %v5812_v16 }
 0x332   :  { %v3568_v28 = vpop.f32.mrb[0].mxu0  ;;  %v3912_v29 = vpop.f32.mrb[0].mxu1 }
 0x333   :  { %v4940_v30 = vadd.f32 %v3568_v28, %v656_v24  ;;  %v4944_v31 = vadd.f32 %v3912_v29, %v664_v25  ;;  %v3570_v32 = vpop.f32.mrb[1].mxu0  ;;  %v3914_v33 = vpop.f32.mrb[1].mxu1 }
 0x334   :  { %v4941_v34 = vadd.f32 %v3570_v32, %v660_v26  ;;  %v4945_v35 = vadd.f32 %v3914_v33, %v668_v27  ;;  %v3572_v36 = vpop.f32.mrb[2].mxu0  ;;  %v3916_v37 = vpop.f32.mrb[2].mxu1 }
 0x335   :  { %vm3921_vm0 = vcmp.gt.f32.partialorder %v4940_v30, 0.0  ;;  %v3929_v38 = vmul.f32 0.3, %v4940_v30  ;;  %vm3923_vm1 = vcmp.gt.f32.partialorder %v4944_v31, 0.0  ;;  %v3931_v39 = vmul.f32 0.3, %v4944_v31 }
 0x336   :  { %vm3922_vm2 = vcmp.gt.f32.partialorder %v4941_v34, 0.0  ;;  %v3930_v40 = vmul.f32 0.3, %v4941_v34  ;;  %vm3924_vm3 = vcmp.gt.f32.partialorder %v4945_v35, 0.0  ;;  %v3932_v41 = vmul.f32 0.3, %v4945_v35 }
 0x337   :  { %v4942_v42 = vadd.f32 %v3572_v36, %v656_v24  ;;  %v4946_v43 = vadd.f32 %v3916_v37, %v664_v25  ;;  %v3574_v44 = vpop.f32.mrb[3].mxu0  ;;  %v3918_v45 = vpop.f32.mrb[3].mxu1  ;;  %v3937_v46 = vsel %vm3921_vm0, %v4940_v30, %v3929_v38  ;;  %v3939_v47 = vsel %vm3923_vm1, %v4944_v31, %v3931_v39 }
 0x338   :  { %v4943_v48 = vadd.f32 %v3574_v44, %v660_v26  ;;  %v4947_v49 = vadd.f32 %v3918_v45, %v668_v27  ;;  %v3938_v56 = vsel %vm3922_vm2, %v4941_v34, %v3930_v40  ;;  %v3940_v57 = vsel %vm3924_vm3, %v4945_v35, %v3932_v41  ;;  %v4893_v26 = vld [vmem:[#allocation2] ss:$0 sm:$0xff] }
 0x339   :  { %vm3925_vm4 = vcmp.gt.f32.partialorder %v4942_v42, 0.0  ;;  %v3933_v50 = vmul.f32 0.3, %v4942_v42  ;;  %vm3927_vm5 = vcmp.gt.f32.partialorder %v4946_v43, 0.0  ;;  %v3935_v51 = vmul.f32 0.3, %v4946_v43 }
 0x33a   :  { %vm3926_vm6 = vcmp.gt.f32.partialorder %v4943_v48, 0.0  ;;  %v3934_v52 = vmul.f32 0.3, %v4943_v48  ;;  %vm3928_vm7 = vcmp.gt.f32.partialorder %v4947_v49, 0.0  ;;  %v3936_v53 = vmul.f32 0.3, %v4947_v49 }
 0x33b   :  { %v3941_v54 = vsel %vm3925_vm4, %v4942_v42, %v3933_v50  ;;  %v3943_v55 = vsel %vm3927_vm5, %v4946_v43, %v3935_v51 }
 0x33c   :  { %v3945_v58 = vpack.c.bf16 %v3941_v54, %v3937_v46  ;;  %v3947_v59 = vpack.c.bf16 %v3943_v55, %v3939_v47  ;;  %v3942_v60 = vsel %vm3926_vm6, %v4943_v48, %v3934_v52  ;;  %v3944_v61 = vsel %vm3928_vm7, %v4947_v49, %v3936_v53 }
 0x33d   :  { %v3946_v62 = vpack.c.bf16 %v3942_v60, %v3938_v56  ;;  %v3948_v63 = vpack.c.bf16 %v3944_v61, %v3940_v57 }
 0x33f   :  { %4244 = vmatprep.mubr.bf16.mxu0 %v3946_v62  ;;  %4285 = vmatprep.mubr.bf16.mxu1 %v3948_v63 }
 0x340   :  { %4245 = vmatmul.mubr.bf16.vlgmr.msra.gmra.mrb[4].mxu0 %v3945_v58  ;;  %4286 = vmatmul.mubr.bf16.vlgmr.msra.gmra.mrb[4].mxu1 %v3947_v59 }
 0x413   :  { %v4912_v0 = vpop.f32.mrb[4].mxu0  ;;  %v4934_v1 = vpop.f32.mrb[4].mxu1 }
 0x414   :  { %v4913_v3 = vpop.f32.mrb[5].mxu0  ;;  %v4935_v4 = vpop.f32.mrb[5].mxu1 }
 0x415   :  { %v4914_v5 = vadd.f32 %v4913_v3, %v4912_v0  ;;  %v4936_v6 = vadd.f32 %v4935_v4, %v4934_v1  ;;  %v4915_v7 = vpop.f32.mrb[6].mxu0  ;;  %v4937_v8 = vpop.f32.mrb[6].mxu1 }
 0x416   :  { %v4916_v9 = vpop.f32.mrb[7].mxu0  ;;  %v4938_v10 = vpop.f32.mrb[7].mxu1 }
 0x417   :  { %v4247_v11 = vadd.f32 %v4914_v5, %v4859_v2  ;;  %v4917_v12 = vadd.f32 %v4916_v9, %v4915_v7  ;;  %v4939_v13 = vadd.f32 %v4938_v10, %v4937_v8 }
 0x419   :  { %v4288_v14 = vadd.f32 %v4936_v6, %v4247_v11  ;;  %v4250_v15 = vadd.f32 %v4917_v12, %v4859_v2 }
 0x41b   :  { %v4296_v16 = vmul.f32 0.3, %v4288_v14  ;;  %v4291_v17 = vadd.f32 %v4939_v13, %v4250_v15  ;;  %vm4294_vm8 = vcmp.gt.f32.partialorder %v4288_v14, 0.0 }
 0x41d   :  { %v4297_v19 = vmul.f32 0.3, %v4291_v17  ;;  %v4298_v20 = vsel %vm4294_vm8, %v4288_v14, %v4296_v16  ;;  %vm4295_vm10 = vcmp.gt.f32.partialorder %v4291_v17, 0.0 }
 0x41e   :  { %v4307_v21 = vmul.f32 %v4892_v18, %v4298_v20 }
 0x41f   :  { %v4299_v22 = vsel %vm4295_vm10, %v4291_v17, %v4297_v19 }
 0x420   :  { %v4310_v23 = vsel %vm4309_vm9, %v4307_v21, 0.0  ;;  %v4308_v24 = vmul.f32 %v4892_v18, %v4299_v22 }
 0x421   :  { %4311 = vadd.xlane.f32.xlu0 %v4310_v23 }
 0x422   :  { %v4313_v25 = vsel %vm4309_vm9, %v4308_v24, 0.0 }
 0x425   :  { %4314 = vadd.xlane.f32.xlu0 %v4313_v25 }
 0x4ae   :  { %v4312_v27 = vpop.xlane.xlu0 %4311 }
 0x4af   :  { %v4323_v28 = vadd.f32 %v4893_v26, %v4312_v27 }
 0x4b1   :  { %v4894_v29 = vmul.f32 -1.442695, %v4323_v28 }
 0x4b2   :  { %v4315_v30 = vpop.xlane.xlu0 %4314 }
 0x4b3   :  { %5813 = vpow2.f32 %v4894_v29  ;;  %v4324_v31 = vadd.f32 %v4893_v26, %v4315_v30 }
 0x4b5   :  { %v4895_v32 = vmul.f32 -1.442695, %v4324_v31 }
 0x4b7   :  { %5815 = vpow2.f32 %v4895_v32 }
 0x4bd   :  { %v5814_v33 = vpop.eup %5813 }
 0x4be   :  { %v4331_v34 = vadd.f32 1.0, %v5814_v33 }
 0x4c0   :  { %5817 = vrcp.f32 %v4331_v34 }
 0x4c1   :  { %v5816_v35 = vpop.eup %5815 }
 0x4c2   :  { %v4332_v36 = vadd.f32 1.0, %v5816_v35 }
 0x4c4   :  { %5819 = vrcp.f32 %v4332_v36 }
 0x4ca   :  { %v5818_v37 = vpop.eup %5817 }
 0x4cb   :  { %4338 = vst.msk [vmem:[%s6160_s7] sm:$0xff] %vm4337_vm11, %v5818_v37 }
 0x4ce   :  { %v5820_v38 = vpop.eup %5819 }
 0x4cf   :  { %4339 = vst.msk [vmem:[%s6160_s7 + $0x8] sm:$0xff] %vm4337_vm11, %v5820_v38 }
 0x4d0   :  { %4344 = vsyncpa [#allocation4], 1 }
 0x4d1   :  { %4345 = vsyncpa [#allocation6], 1 }
 0x4d2   :  { %4346 = vsyncpa [#allocation9], 1 }

</bundles_post_ra>
